<compile_context>
chip_gen: v7x
topology: tpu7x:2x2x1
jax: 0.10.0
libtpu: 0.0.40
codegen_flags: <defaults>
</compile_context>

<pallas_src>
import jax
import jax.numpy as jnp
import numpy as np
from jax.experimental import pallas as pl
from jax.experimental.pallas import tpu as pltpu

H = 5          # LSTM hidden size
BG = 8         # batch rows per grid step (sublane tile)
HALF = 128     # one vreg-width half
GW = 2 * HALF  # packed gate width (2 x 128-lane halves)
H_LANE = 64    # lane offset (inside a half) where real h lives / nonzero W_hh rows

# PyTorch gate order in the stacked weights: 0=i, 1=f, 2=g, 3=o.
GATE_COL = {1: 0, 3: 64, 0: 128, 2: 192}          # f, o, i, g column bases
GATE_SCALE = {0: 1.0, 1: 1.0, 2: 2.0, 3: 1.0}     # g scaled by 2 (tanh = 2*sig(2z)-1)


def lstm_fc_kernel(x_ref, wih_ref, whh_ref, b_ref, wfc_ref, bfc_ref, out_ref):
    """
    x_ref   : (BG, T)        f32  VMEM  (input_size == 1, squeezed)
    wih_ref : (1, GW)        f32  VMEM  packed input weights (gate layout above)
    whh_ref : (HALF, GW)     f32  VMEM  packed W_hh^T, nonzero rows only at 64..68
    b_ref   : (1, GW)        f32  VMEM  packed b_ih + b_hh
    wfc_ref : (1, HALF)      f32  VMEM  fc1.weight at lanes 64..68, zero elsewhere
    bfc_ref : (1,)           f32  SMEM  fc1.bias
    out_ref : (BG, 1)        f32  VMEM
    """
    bsz, T = x_ref.shape

    # State kept as full 128-lane vregs; real c at lanes 0..4, real h at lanes 64..68.
    h = jnp.zeros((bsz, HALF), jnp.float32)
    c = jnp.zeros((bsz, HALF), jnp.float32)

    # T is small & static -> unrolled loop (LLO scheduler sees the whole chain).
    for t in range(T):
        x_t = x_ref[:, t:t + 1]                              # (bsz, 1)
        # Input-side term in-loop (cheap VPU, hidden under MXU latency) + one
        # f32 MXU dot covering all 4 gates (2 result vregs).
        pre = (x_t * wih_ref[...] + b_ref[...]
               + jnp.dot(h, whh_ref[...], preferred_element_type=jnp.float32))
        pA = pre[:, :HALF]          # f @ 0..4,  o @ 64..68   (128-aligned slices)
        pB = pre[:, HALF:]          # i @ 0..4,  2*g_pre @ 64..68

        sA = jax.nn.sigmoid(pA)     # f @ 0..4,  o @ 64..68
        sB = jax.nn.sigmoid(pB)     # i @ 0..4,  sigmoid(2*g_pre) @ 64..68

        # tanh(g_pre) aligned to lanes 0..4 (roll by 64 is direction-independent).
        g_al = 2.0 * pltpu.roll(sB, 64, 1) - 1.0
        c = sA * c + sB * g_al                               # f*c + i*g   @ 0..4
        tanh_c = 2.0 * jax.nn.sigmoid(2.0 * c) - 1.0         # tanh(c)     @ 0..4
        h = sA * pltpu.roll(tanh_c, 64, 1)                   # o*tanh(c)   @ 64..68
        # Junk in unused lanes of h/c is bounded and is killed by the zero rows
        # of whh / zero lanes of wfc, so it never reaches the real lanes.

    h_relu = jnp.maximum(h, 0.0)
    out_ref[...] = (jnp.sum(h_relu * wfc_ref[...], axis=1, keepdims=True)
                    + bfc_ref[0])


def prepare_params(params):
    """One-time packing / padding of weights (hoisted out of the per-call path)."""
    w_ih, w_hh, b_ih, b_hh, w_fc, b_fc = params
    f32 = jnp.float32

    wih_p = jnp.zeros((1, GW), f32)
    b_p = jnp.zeros((1, GW), f32)
    whh_p = jnp.zeros((HALF, GW), f32)
    for gate, col in GATE_COL.items():
        s = GATE_SCALE[gate]
        rows = slice(gate * H, (gate + 1) * H)
        wih_p = wih_p.at[0, col:col + H].set(s * w_ih[rows, 0].astype(f32))
        b_p = b_p.at[0, col:col + H].set(s * (b_ih[rows] + b_hh[rows]).astype(f32))
        # gates[:, u] = sum_j h[:, j] * W_hh[gate*H + u, j]; h lives at lanes 64..68.
        whh_p = whh_p.at[H_LANE:H_LANE + H, col:col + H].set(
            s * w_hh[rows, :].T.astype(f32))

    wfc_p = jnp.zeros((1, HALF), f32).at[0, H_LANE:H_LANE + H].set(
        w_fc[0].astype(f32))
    bfc_p = b_fc.reshape(1).astype(f32)
    return (wih_p, whh_p, b_p, wfc_p, bfc_p)


@jax.jit
def lstm_fc_forward(x, packed_params):
    """x: (B, T, 1) f32, packed_params from prepare_params.  Returns (B, 1) f32."""
    wih_p, whh_p, b_p, wfc_p, bfc_p = packed_params
    B, T, I = x.shape
    assert I == 1

    x2 = x[:, :, 0].astype(jnp.float32)                      # (B, T)
    B_pad = ((B + BG - 1) // BG) * BG
    if B_pad != B:
        x2 = jnp.pad(x2, ((0, B_pad - B), (0, 0)))

    out_pad = pl.pallas_call(
        lstm_fc_kernel,
        out_shape=jax.ShapeDtypeStruct((B_pad, 1), jnp.float32),
        grid=(B_pad // BG,),
        in_specs=[
            pl.BlockSpec((BG, T), lambda b: (b, 0)),          # x (per batch group)
            pl.BlockSpec((1, GW), lambda b: (0, 0)),          # packed W_ih
            pl.BlockSpec((HALF, GW), lambda b: (0, 0)),       # packed W_hh^T
            pl.BlockSpec((1, GW), lambda b: (0, 0)),          # packed bias
            pl.BlockSpec((1, HALF), lambda b: (0, 0)),        # fc weight
            pl.BlockSpec(memory_space=pltpu.MemorySpace.SMEM),  # fc bias (scalar)
        ],
        out_specs=pl.BlockSpec((BG, 1), lambda b: (b, 0)),
        compiler_params=pltpu.CompilerParams(
            dimension_semantics=("parallel",)),
    )(x2, wih_p, whh_p, b_p, wfc_p, bfc_p)

    return out_pad[:B, :]


def ref_forward(x, params):
    """Pure-JAX reference mirroring torch.nn.LSTM(batch_first) + ReLU + Linear."""
    w_ih, w_hh, b_ih, b_hh, w_fc, b_fc = params
    B, T, _ = x.shape

    def step(carry, x_t):
        h, c = carry
        gates = x_t @ w_ih.T + h @ w_hh.T + b_ih + b_hh       # (B, 4H), order i,f,g,o
        i, f, g, o = jnp.split(gates, 4, axis=1)
        i, f, o = jax.nn.sigmoid(i), jax.nn.sigmoid(f), jax.nn.sigmoid(o)
        g = jnp.tanh(g)
        c = f * c + i * g
        h = o * jnp.tanh(c)
        return (h, c), None

    init = (jnp.zeros((B, H), jnp.float32), jnp.zeros((B, H), jnp.float32))
    (h_last, _), _ = jax.lax.scan(step, init, jnp.transpose(x, (1, 0, 2)))
    return jnp.maximum(h_last, 0.0) @ w_fc.T + b_fc


def init_params(key):
    """Deterministic init matching PyTorch shapes: U(-1/sqrt(H), 1/sqrt(H))."""
    k = 1.0 / np.sqrt(H)
    ks = jax.random.split(key, 6)
    w_ih = jax.random.uniform(ks[0], (4 * H, 1), jnp.float32, -k, k)
    w_hh = jax.random.uniform(ks[1], (4 * H, H), jnp.float32, -k, k)
    b_ih = jax.random.uniform(ks[2], (4 * H,), jnp.float32, -k, k)
    b_hh = jax.random.uniform(ks[3], (4 * H,), jnp.float32, -k, k)
    w_fc = jax.random.uniform(ks[4], (1, H), jnp.float32, -k, k)
    b_fc = jax.random.uniform(ks[5], (1,), jnp.float32, -k, k)
    return (w_ih, w_hh, b_ih, b_hh, w_fc, b_fc)


if __name__ == "__main__":
    key = jax.random.PRNGKey(0)
    kp, kx = jax.random.split(key)
    params = init_params(kp)
    packed = jax.tree_util.tree_map(jax.block_until_ready, prepare_params(params))

    B, T = 2, 8
    x = jax.random.normal(kx, (B, T, 1), jnp.float32)

    out = jax.block_until_ready(lstm_fc_forward(x, packed))
    ref = jax.block_until_ready(ref_forward(x, params))

    assert out.shape == (B, 1)
    np.testing.assert_allclose(np.asarray(out), np.asarray(ref), rtol=1e-2, atol=1e-2)
    print("KERNEL_OK")
</pallas_src>

<mosaic_0001>
module attributes {stable_mosaic.version = 11 : i64} {
  func.func @lstm_fc_kernel(%arg0: i32, %arg1: memref<8x8xf32, #tpu.memory_space<vmem>>, %arg2: memref<1x256xf32, #tpu.memory_space<vmem>>, %arg3: memref<128x256xf32, #tpu.memory_space<vmem>>, %arg4: memref<1x256xf32, #tpu.memory_space<vmem>>, %arg5: memref<1x128xf32, #tpu.memory_space<vmem>>, %arg6: memref<1xf32, #tpu.memory_space<smem>>, %arg7: memref<8x1xf32, #tpu.memory_space<vmem>>) attributes {dimension_semantics = [#tpu.dimension_semantics<parallel>], iteration_bounds = array<i64: 1>, scalar_prefetch = 0 : i64, scratch_operands = 0 : i64, tpu.core_type = #tpu.core_type<tc>, window_params = [{transform_indices = @transform_0, window_bounds = array<i64: 8, 8>}, {pipeline_mode = #tpu.pipeline_mode<synchronous>, transform_indices = @transform_1, window_bounds = array<i64: 1, 256>}, {pipeline_mode = #tpu.pipeline_mode<synchronous>, transform_indices = @transform_2, window_bounds = array<i64: 128, 256>}, {pipeline_mode = #tpu.pipeline_mode<synchronous>, transform_indices = @transform_3, window_bounds = array<i64: 1, 256>}, {pipeline_mode = #tpu.pipeline_mode<synchronous>, transform_indices = @transform_4, window_bounds = array<i64: 1, 128>}, {transform_indices = @transform_5, window_bounds = array<i64: 1>}, {transform_indices = @transform_6, window_bounds = array<i64: 8, 1>}]} {
    %cst = arith.constant 0.000000e+00 : f32
    %0 = vector.broadcast %cst : f32 to vector<8x128xf32>
    %cst_0 = arith.constant 0.000000e+00 : f32
    %1 = vector.broadcast %cst_0 : f32 to vector<8x128xf32>
    %c0 = arith.constant 0 : index
    %c0_1 = arith.constant 0 : index
    %2 = vector.load %arg1[%c0, %c0_1] : memref<8x8xf32, #tpu.memory_space<vmem>>, vector<8x1xf32>
    %c0_2 = arith.constant 0 : index
    %c0_3 = arith.constant 0 : index
    %3 = vector.load %arg2[%c0_2, %c0_3] : memref<1x256xf32, #tpu.memory_space<vmem>>, vector<1x256xf32>
    %4 = vector.broadcast %2 : vector<8x1xf32> to vector<8x256xf32>
    %5 = vector.broadcast %3 : vector<1x256xf32> to vector<8x256xf32>
    %6 = arith.mulf %4, %5 : vector<8x256xf32>
    %c0_4 = arith.constant 0 : index
    %c0_5 = arith.constant 0 : index
    %7 = vector.load %arg4[%c0_4, %c0_5] : memref<1x256xf32, #tpu.memory_space<vmem>>, vector<1x256xf32>
    %8 = vector.broadcast %7 : vector<1x256xf32> to vector<8x256xf32>
    %9 = arith.addf %6, %8 : vector<8x256xf32>
    %c0_6 = arith.constant 0 : index
    %c0_7 = arith.constant 0 : index
    %10 = vector.load %arg3[%c0_6, %c0_7] : memref<128x256xf32, #tpu.memory_space<vmem>>, vector<128x256xf32>
    %cst_8 = arith.constant dense<0.000000e+00> : vector<8x256xf32>
    %11 = tpu.matmul %0, %10, %cst_8 {dimension_numbers = #tpu.dot_dimension_numbers<[1], [0], [0], [1], [0, 0, 1, 1], [], []>} : vector<8x128xf32>, vector<128x256xf32>, vector<8x256xf32> -> vector<8x256xf32>
    %12 = arith.addf %9, %11 : vector<8x256xf32>
    %13 = vector.extract_strided_slice %12 {offsets = [0, 0], sizes = [8, 128], strides = [1, 1]} : vector<8x256xf32> to vector<8x128xf32>
    %14 = vector.extract_strided_slice %12 {offsets = [0, 128], sizes = [8, 128], strides = [1, 1]} : vector<8x256xf32> to vector<8x128xf32>
    %15 = arith.negf %13 : vector<8x128xf32>
    %16 = math.exp %15 : vector<8x128xf32>
    %cst_9 = arith.constant 1.000000e+00 : f32
    %17 = vector.broadcast %cst_9 : f32 to vector<8x128xf32>
    %18 = arith.addf %17, %16 : vector<8x128xf32>
    %19 = arith.divf %17, %18 : vector<8x128xf32>
    %20 = arith.negf %14 : vector<8x128xf32>
    %21 = math.exp %20 : vector<8x128xf32>
    %cst_10 = arith.constant 1.000000e+00 : f32
    %22 = vector.broadcast %cst_10 : f32 to vector<8x128xf32>
    %23 = arith.addf %22, %21 : vector<8x128xf32>
    %24 = arith.divf %22, %23 : vector<8x128xf32>
    %c64_i32 = arith.constant 64 : i32
    %25 = tpu.dynamic_rotate %24 by %c64_i32 dim 1 : vector<8x128xf32>, i32 -> vector<8x128xf32>
    %cst_11 = arith.constant 2.000000e+00 : f32
    %26 = vector.broadcast %cst_11 : f32 to vector<8x128xf32>
    %27 = arith.mulf %26, %25 : vector<8x128xf32>
    %cst_12 = arith.constant 1.000000e+00 : f32
    %28 = vector.broadcast %cst_12 : f32 to vector<8x128xf32>
    %29 = arith.subf %27, %28 : vector<8x128xf32>
    %30 = arith.mulf %19, %1 : vector<8x128xf32>
    %31 = arith.mulf %24, %29 : vector<8x128xf32>
    %32 = arith.addf %30, %31 : vector<8x128xf32>
    %cst_13 = arith.constant 2.000000e+00 : f32
    %33 = vector.broadcast %cst_13 : f32 to vector<8x128xf32>
    %34 = arith.mulf %33, %32 : vector<8x128xf32>
    %35 = arith.negf %34 : vector<8x128xf32>
    %36 = math.exp %35 : vector<8x128xf32>
    %cst_14 = arith.constant 1.000000e+00 : f32
    %37 = vector.broadcast %cst_14 : f32 to vector<8x128xf32>
    %38 = arith.addf %37, %36 : vector<8x128xf32>
    %39 = arith.divf %37, %38 : vector<8x128xf32>
    %cst_15 = arith.constant 2.000000e+00 : f32
    %40 = vector.broadcast %cst_15 : f32 to vector<8x128xf32>
    %41 = arith.mulf %40, %39 : vector<8x128xf32>
    %cst_16 = arith.constant 1.000000e+00 : f32
    %42 = vector.broadcast %cst_16 : f32 to vector<8x128xf32>
    %43 = arith.subf %41, %42 : vector<8x128xf32>
    %c64_i32_17 = arith.constant 64 : i32
    %44 = tpu.dynamic_rotate %43 by %c64_i32_17 dim 1 : vector<8x128xf32>, i32 -> vector<8x128xf32>
    %45 = arith.mulf %19, %44 : vector<8x128xf32>
    %c0_18 = arith.constant 0 : index
    %c1 = arith.constant 1 : index
    %46 = vector.load %arg1[%c0_18, %c1] : memref<8x8xf32, #tpu.memory_space<vmem>>, vector<8x1xf32>
    %c0_19 = arith.constant 0 : index
    %c0_20 = arith.constant 0 : index
    %47 = vector.load %arg2[%c0_19, %c0_20] : memref<1x256xf32, #tpu.memory_space<vmem>>, vector<1x256xf32>
    %48 = vector.broadcast %46 : vector<8x1xf32> to vector<8x256xf32>
    %49 = vector.broadcast %47 : vector<1x256xf32> to vector<8x256xf32>
    %50 = arith.mulf %48, %49 : vector<8x256xf32>
    %c0_21 = arith.constant 0 : index
    %c0_22 = arith.constant 0 : index
    %51 = vector.load %arg4[%c0_21, %c0_22] : memref<1x256xf32, #tpu.memory_space<vmem>>, vector<1x256xf32>
    %52 = vector.broadcast %51 : vector<1x256xf32> to vector<8x256xf32>
    %53 = arith.addf %50, %52 : vector<8x256xf32>
    %c0_23 = arith.constant 0 : index
    %c0_24 = arith.constant 0 : index
    %54 = vector.load %arg3[%c0_23, %c0_24] : memref<128x256xf32, #tpu.memory_space<vmem>>, vector<128x256xf32>
    %cst_25 = arith.constant dense<0.000000e+00> : vector<8x256xf32>
    %55 = tpu.matmul %45, %54, %cst_25 {dimension_numbers = #tpu.dot_dimension_numbers<[1], [0], [0], [1], [0, 0, 1, 1], [], []>} : vector<8x128xf32>, vector<128x256xf32>, vector<8x256xf32> -> vector<8x256xf32>
    %56 = arith.addf %53, %55 : vector<8x256xf32>
    %57 = vector.extract_strided_slice %56 {offsets = [0, 0], sizes = [8, 128], strides = [1, 1]} : vector<8x256xf32> to vector<8x128xf32>
    %58 = vector.extract_strided_slice %56 {offsets = [0, 128], sizes = [8, 128], strides = [1, 1]} : vector<8x256xf32> to vector<8x128xf32>
    %59 = arith.negf %57 : vector<8x128xf32>
    %60 = math.exp %59 : vector<8x128xf32>
    %cst_26 = arith.constant 1.000000e+00 : f32
    %61 = vector.broadcast %cst_26 : f32 to vector<8x128xf32>
    %62 = arith.addf %61, %60 : vector<8x128xf32>
    %63 = arith.divf %61, %62 : vector<8x128xf32>
    %64 = arith.negf %58 : vector<8x128xf32>
    %65 = math.exp %64 : vector<8x128xf32>
    %cst_27 = arith.constant 1.000000e+00 : f32
    %66 = vector.broadcast %cst_27 : f32 to vector<8x128xf32>
    %67 = arith.addf %66, %65 : vector<8x128xf32>
    %68 = arith.divf %66, %67 : vector<8x128xf32>
    %c64_i32_28 = arith.constant 64 : i32
    %69 = tpu.dynamic_rotate %68 by %c64_i32_28 dim 1 : vector<8x128xf32>, i32 -> vector<8x128xf32>
    %cst_29 = arith.constant 2.000000e+00 : f32
    %70 = vector.broadcast %cst_29 : f32 to vector<8x128xf32>
    %71 = arith.mulf %70, %69 : vector<8x128xf32>
    %cst_30 = arith.constant 1.000000e+00 : f32
    %72 = vector.broadcast %cst_30 : f32 to vector<8x128xf32>
    %73 = arith.subf %71, %72 : vector<8x128xf32>
    %74 = arith.mulf %63, %32 : vector<8x128xf32>
    %75 = arith.mulf %68, %73 : vector<8x128xf32>
    %76 = arith.addf %74, %75 : vector<8x128xf32>
    %cst_31 = arith.constant 2.000000e+00 : f32
    %77 = vector.broadcast %cst_31 : f32 to vector<8x128xf32>
    %78 = arith.mulf %77, %76 : vector<8x128xf32>
    %79 = arith.negf %78 : vector<8x128xf32>
    %80 = math.exp %79 : vector<8x128xf32>
    %cst_32 = arith.constant 1.000000e+00 : f32
    %81 = vector.broadcast %cst_32 : f32 to vector<8x128xf32>
    %82 = arith.addf %81, %80 : vector<8x128xf32>
    %83 = arith.divf %81, %82 : vector<8x128xf32>
    %cst_33 = arith.constant 2.000000e+00 : f32
    %84 = vector.broadcast %cst_33 : f32 to vector<8x128xf32>
    %85 = arith.mulf %84, %83 : vector<8x128xf32>
    %cst_34 = arith.constant 1.000000e+00 : f32
    %86 = vector.broadcast %cst_34 : f32 to vector<8x128xf32>
    %87 = arith.subf %85, %86 : vector<8x128xf32>
    %c64_i32_35 = arith.constant 64 : i32
    %88 = tpu.dynamic_rotate %87 by %c64_i32_35 dim 1 : vector<8x128xf32>, i32 -> vector<8x128xf32>
    %89 = arith.mulf %63, %88 : vector<8x128xf32>
    %c0_36 = arith.constant 0 : index
    %c2 = arith.constant 2 : index
    %90 = vector.load %arg1[%c0_36, %c2] : memref<8x8xf32, #tpu.memory_space<vmem>>, vector<8x1xf32>
    %c0_37 = arith.constant 0 : index
    %c0_38 = arith.constant 0 : index
    %91 = vector.load %arg2[%c0_37, %c0_38] : memref<1x256xf32, #tpu.memory_space<vmem>>, vector<1x256xf32>
    %92 = vector.broadcast %90 : vector<8x1xf32> to vector<8x256xf32>
    %93 = vector.broadcast %91 : vector<1x256xf32> to vector<8x256xf32>
    %94 = arith.mulf %92, %93 : vector<8x256xf32>
    %c0_39 = arith.constant 0 : index
    %c0_40 = arith.constant 0 : index
    %95 = vector.load %arg4[%c0_39, %c0_40] : memref<1x256xf32, #tpu.memory_space<vmem>>, vector<1x256xf32>
    %96 = vector.broadcast %95 : vector<1x256xf32> to vector<8x256xf32>
    %97 = arith.addf %94, %96 : vector<8x256xf32>
    %c0_41 = arith.constant 0 : index
    %c0_42 = arith.constant 0 : index
    %98 = vector.load %arg3[%c0_41, %c0_42] : memref<128x256xf32, #tpu.memory_space<vmem>>, vector<128x256xf32>
    %cst_43 = arith.constant dense<0.000000e+00> : vector<8x256xf32>
    %99 = tpu.matmul %89, %98, %cst_43 {dimension_numbers = #tpu.dot_dimension_numbers<[1], [0], [0], [1], [0, 0, 1, 1], [], []>} : vector<8x128xf32>, vector<128x256xf32>, vector<8x256xf32> -> vector<8x256xf32>
    %100 = arith.addf %97, %99 : vector<8x256xf32>
    %101 = vector.extract_strided_slice %100 {offsets = [0, 0], sizes = [8, 128], strides = [1, 1]} : vector<8x256xf32> to vector<8x128xf32>
    %102 = vector.extract_strided_slice %100 {offsets = [0, 128], sizes = [8, 128], strides = [1, 1]} : vector<8x256xf32> to vector<8x128xf32>
    %103 = arith.negf %101 : vector<8x128xf32>
    %104 = math.exp %103 : vector<8x128xf32>
    %cst_44 = arith.constant 1.000000e+00 : f32
    %105 = vector.broadcast %cst_44 : f32 to vector<8x128xf32>
    %106 = arith.addf %105, %104 : vector<8x128xf32>
    %107 = arith.divf %105, %106 : vector<8x128xf32>
    %108 = arith.negf %102 : vector<8x128xf32>
    %109 = math.exp %108 : vector<8x128xf32>
    %cst_45 = arith.constant 1.000000e+00 : f32
    %110 = vector.broadcast %cst_45 : f32 to vector<8x128xf32>
    %111 = arith.addf %110, %109 : vector<8x128xf32>
    %112 = arith.divf %110, %111 : vector<8x128xf32>
    %c64_i32_46 = arith.constant 64 : i32
    %113 = tpu.dynamic_rotate %112 by %c64_i32_46 dim 1 : vector<8x128xf32>, i32 -> vector<8x128xf32>
    %cst_47 = arith.constant 2.000000e+00 : f32
    %114 = vector.broadcast %cst_47 : f32 to vector<8x128xf32>
    %115 = arith.mulf %114, %113 : vector<8x128xf32>
    %cst_48 = arith.constant 1.000000e+00 : f32
    %116 = vector.broadcast %cst_48 : f32 to vector<8x128xf32>
    %117 = arith.subf %115, %116 : vector<8x128xf32>
    %118 = arith.mulf %107, %76 : vector<8x128xf32>
    %119 = arith.mulf %112, %117 : vector<8x128xf32>
    %120 = arith.addf %118, %119 : vector<8x128xf32>
    %cst_49 = arith.constant 2.000000e+00 : f32
    %121 = vector.broadcast %cst_49 : f32 to vector<8x128xf32>
    %122 = arith.mulf %121, %120 : vector<8x128xf32>
    %123 = arith.negf %122 : vector<8x128xf32>
    %124 = math.exp %123 : vector<8x128xf32>
    %cst_50 = arith.constant 1.000000e+00 : f32
    %125 = vector.broadcast %cst_50 : f32 to vector<8x128xf32>
    %126 = arith.addf %125, %124 : vector<8x128xf32>
    %127 = arith.divf %125, %126 : vector<8x128xf32>
    %cst_51 = arith.constant 2.000000e+00 : f32
    %128 = vector.broadcast %cst_51 : f32 to vector<8x128xf32>
    %129 = arith.mulf %128, %127 : vector<8x128xf32>
    %cst_52 = arith.constant 1.000000e+00 : f32
    %130 = vector.broadcast %cst_52 : f32 to vector<8x128xf32>
    %131 = arith.subf %129, %130 : vector<8x128xf32>
    %c64_i32_53 = arith.constant 64 : i32
    %132 = tpu.dynamic_rotate %131 by %c64_i32_53 dim 1 : vector<8x128xf32>, i32 -> vector<8x128xf32>
    %133 = arith.mulf %107, %132 : vector<8x128xf32>
    %c0_54 = arith.constant 0 : index
    %c3 = arith.constant 3 : index
    %134 = vector.load %arg1[%c0_54, %c3] : memref<8x8xf32, #tpu.memory_space<vmem>>, vector<8x1xf32>
    %c0_55 = arith.constant 0 : index
    %c0_56 = arith.constant 0 : index
    %135 = vector.load %arg2[%c0_55, %c0_56] : memref<1x256xf32, #tpu.memory_space<vmem>>, vector<1x256xf32>
    %136 = vector.broadcast %134 : vector<8x1xf32> to vector<8x256xf32>
    %137 = vector.broadcast %135 : vector<1x256xf32> to vector<8x256xf32>
    %138 = arith.mulf %136, %137 : vector<8x256xf32>
    %c0_57 = arith.constant 0 : index
    %c0_58 = arith.constant 0 : index
    %139 = vector.load %arg4[%c0_57, %c0_58] : memref<1x256xf32, #tpu.memory_space<vmem>>, vector<1x256xf32>
    %140 = vector.broadcast %139 : vector<1x256xf32> to vector<8x256xf32>
    %141 = arith.addf %138, %140 : vector<8x256xf32>
    %c0_59 = arith.constant 0 : index
    %c0_60 = arith.constant 0 : index
    %142 = vector.load %arg3[%c0_59, %c0_60] : memref<128x256xf32, #tpu.memory_space<vmem>>, vector<128x256xf32>
    %cst_61 = arith.constant dense<0.000000e+00> : vector<8x256xf32>
    %143 = tpu.matmul %133, %142, %cst_61 {dimension_numbers = #tpu.dot_dimension_numbers<[1], [0], [0], [1], [0, 0, 1, 1], [], []>} : vector<8x128xf32>, vector<128x256xf32>, vector<8x256xf32> -> vector<8x256xf32>
    %144 = arith.addf %141, %143 : vector<8x256xf32>
    %145 = vector.extract_strided_slice %144 {offsets = [0, 0], sizes = [8, 128], strides = [1, 1]} : vector<8x256xf32> to vector<8x128xf32>
    %146 = vector.extract_strided_slice %144 {offsets = [0, 128], sizes = [8, 128], strides = [1, 1]} : vector<8x256xf32> to vector<8x128xf32>
    %147 = arith.negf %145 : vector<8x128xf32>
    %148 = math.exp %147 : vector<8x128xf32>
    %cst_62 = arith.constant 1.000000e+00 : f32
    %149 = vector.broadcast %cst_62 : f32 to vector<8x128xf32>
    %150 = arith.addf %149, %148 : vector<8x128xf32>
    %151 = arith.divf %149, %150 : vector<8x128xf32>
    %152 = arith.negf %146 : vector<8x128xf32>
    %153 = math.exp %152 : vector<8x128xf32>
    %cst_63 = arith.constant 1.000000e+00 : f32
    %154 = vector.broadcast %cst_63 : f32 to vector<8x128xf32>
    %155 = arith.addf %154, %153 : vector<8x128xf32>
    %156 = arith.divf %154, %155 : vector<8x128xf32>
    %c64_i32_64 = arith.constant 64 : i32
    %157 = tpu.dynamic_rotate %156 by %c64_i32_64 dim 1 : vector<8x128xf32>, i32 -> vector<8x128xf32>
    %cst_65 = arith.constant 2.000000e+00 : f32
    %158 = vector.broadcast %cst_65 : f32 to vector<8x128xf32>
    %159 = arith.mulf %158, %157 : vector<8x128xf32>
    %cst_66 = arith.constant 1.000000e+00 : f32
    %160 = vector.broadcast %cst_66 : f32 to vector<8x128xf32>
    %161 = arith.subf %159, %160 : vector<8x128xf32>
    %162 = arith.mulf %151, %120 : vector<8x128xf32>
    %163 = arith.mulf %156, %161 : vector<8x128xf32>
    %164 = arith.addf %162, %163 : vector<8x128xf32>
    %cst_67 = arith.constant 2.000000e+00 : f32
    %165 = vector.broadcast %cst_67 : f32 to vector<8x128xf32>
    %166 = arith.mulf %165, %164 : vector<8x128xf32>
    %167 = arith.negf %166 : vector<8x128xf32>
    %168 = math.exp %167 : vector<8x128xf32>
    %cst_68 = arith.constant 1.000000e+00 : f32
    %169 = vector.broadcast %cst_68 : f32 to vector<8x128xf32>
    %170 = arith.addf %169, %168 : vector<8x128xf32>
    %171 = arith.divf %169, %170 : vector<8x128xf32>
    %cst_69 = arith.constant 2.000000e+00 : f32
    %172 = vector.broadcast %cst_69 : f32 to vector<8x128xf32>
    %173 = arith.mulf %172, %171 : vector<8x128xf32>
    %cst_70 = arith.constant 1.000000e+00 : f32
    %174 = vector.broadcast %cst_70 : f32 to vector<8x128xf32>
    %175 = arith.subf %173, %174 : vector<8x128xf32>
    %c64_i32_71 = arith.constant 64 : i32
    %176 = tpu.dynamic_rotate %175 by %c64_i32_71 dim 1 : vector<8x128xf32>, i32 -> vector<8x128xf32>
    %177 = arith.mulf %151, %176 : vector<8x128xf32>
    %c0_72 = arith.constant 0 : index
    %c4 = arith.constant 4 : index
    %178 = vector.load %arg1[%c0_72, %c4] : memref<8x8xf32, #tpu.memory_space<vmem>>, vector<8x1xf32>
    %c0_73 = arith.constant 0 : index
    %c0_74 = arith.constant 0 : index
    %179 = vector.load %arg2[%c0_73, %c0_74] : memref<1x256xf32, #tpu.memory_space<vmem>>, vector<1x256xf32>
    %180 = vector.broadcast %178 : vector<8x1xf32> to vector<8x256xf32>
    %181 = vector.broadcast %179 : vector<1x256xf32> to vector<8x256xf32>
    %182 = arith.mulf %180, %181 : vector<8x256xf32>
    %c0_75 = arith.constant 0 : index
    %c0_76 = arith.constant 0 : index
    %183 = vector.load %arg4[%c0_75, %c0_76] : memref<1x256xf32, #tpu.memory_space<vmem>>, vector<1x256xf32>
    %184 = vector.broadcast %183 : vector<1x256xf32> to vector<8x256xf32>
    %185 = arith.addf %182, %184 : vector<8x256xf32>
    %c0_77 = arith.constant 0 : index
    %c0_78 = arith.constant 0 : index
    %186 = vector.load %arg3[%c0_77, %c0_78] : memref<128x256xf32, #tpu.memory_space<vmem>>, vector<128x256xf32>
    %cst_79 = arith.constant dense<0.000000e+00> : vector<8x256xf32>
    %187 = tpu.matmul %177, %186, %cst_79 {dimension_numbers = #tpu.dot_dimension_numbers<[1], [0], [0], [1], [0, 0, 1, 1], [], []>} : vector<8x128xf32>, vector<128x256xf32>, vector<8x256xf32> -> vector<8x256xf32>
    %188 = arith.addf %185, %187 : vector<8x256xf32>
    %189 = vector.extract_strided_slice %188 {offsets = [0, 0], sizes = [8, 128], strides = [1, 1]} : vector<8x256xf32> to vector<8x128xf32>
    %190 = vector.extract_strided_slice %188 {offsets = [0, 128], sizes = [8, 128], strides = [1, 1]} : vector<8x256xf32> to vector<8x128xf32>
    %191 = arith.negf %189 : vector<8x128xf32>
    %192 = math.exp %191 : vector<8x128xf32>
    %cst_80 = arith.constant 1.000000e+00 : f32
    %193 = vector.broadcast %cst_80 : f32 to vector<8x128xf32>
    %194 = arith.addf %193, %192 : vector<8x128xf32>
    %195 = arith.divf %193, %194 : vector<8x128xf32>
    %196 = arith.negf %190 : vector<8x128xf32>
    %197 = math.exp %196 : vector<8x128xf32>
    %cst_81 = arith.constant 1.000000e+00 : f32
    %198 = vector.broadcast %cst_81 : f32 to vector<8x128xf32>
    %199 = arith.addf %198, %197 : vector<8x128xf32>
    %200 = arith.divf %198, %199 : vector<8x128xf32>
    %c64_i32_82 = arith.constant 64 : i32
    %201 = tpu.dynamic_rotate %200 by %c64_i32_82 dim 1 : vector<8x128xf32>, i32 -> vector<8x128xf32>
    %cst_83 = arith.constant 2.000000e+00 : f32
    %202 = vector.broadcast %cst_83 : f32 to vector<8x128xf32>
    %203 = arith.mulf %202, %201 : vector<8x128xf32>
    %cst_84 = arith.constant 1.000000e+00 : f32
    %204 = vector.broadcast %cst_84 : f32 to vector<8x128xf32>
    %205 = arith.subf %203, %204 : vector<8x128xf32>
    %206 = arith.mulf %195, %164 : vector<8x128xf32>
    %207 = arith.mulf %200, %205 : vector<8x128xf32>
    %208 = arith.addf %206, %207 : vector<8x128xf32>
    %cst_85 = arith.constant 2.000000e+00 : f32
    %209 = vector.broadcast %cst_85 : f32 to vector<8x128xf32>
    %210 = arith.mulf %209, %208 : vector<8x128xf32>
    %211 = arith.negf %210 : vector<8x128xf32>
    %212 = math.exp %211 : vector<8x128xf32>
    %cst_86 = arith.constant 1.000000e+00 : f32
    %213 = vector.broadcast %cst_86 : f32 to vector<8x128xf32>
    %214 = arith.addf %213, %212 : vector<8x128xf32>
    %215 = arith.divf %213, %214 : vector<8x128xf32>
    %cst_87 = arith.constant 2.000000e+00 : f32
    %216 = vector.broadcast %cst_87 : f32 to vector<8x128xf32>
    %217 = arith.mulf %216, %215 : vector<8x128xf32>
    %cst_88 = arith.constant 1.000000e+00 : f32
    %218 = vector.broadcast %cst_88 : f32 to vector<8x128xf32>
    %219 = arith.subf %217, %218 : vector<8x128xf32>
    %c64_i32_89 = arith.constant 64 : i32
    %220 = tpu.dynamic_rotate %219 by %c64_i32_89 dim 1 : vector<8x128xf32>, i32 -> vector<8x128xf32>
    %221 = arith.mulf %195, %220 : vector<8x128xf32>
    %c0_90 = arith.constant 0 : index
    %c5 = arith.constant 5 : index
    %222 = vector.load %arg1[%c0_90, %c5] : memref<8x8xf32, #tpu.memory_space<vmem>>, vector<8x1xf32>
    %c0_91 = arith.constant 0 : index
    %c0_92 = arith.constant 0 : index
    %223 = vector.load %arg2[%c0_91, %c0_92] : memref<1x256xf32, #tpu.memory_space<vmem>>, vector<1x256xf32>
    %224 = vector.broadcast %222 : vector<8x1xf32> to vector<8x256xf32>
    %225 = vector.broadcast %223 : vector<1x256xf32> to vector<8x256xf32>
    %226 = arith.mulf %224, %225 : vector<8x256xf32>
    %c0_93 = arith.constant 0 : index
    %c0_94 = arith.constant 0 : index
    %227 = vector.load %arg4[%c0_93, %c0_94] : memref<1x256xf32, #tpu.memory_space<vmem>>, vector<1x256xf32>
    %228 = vector.broadcast %227 : vector<1x256xf32> to vector<8x256xf32>
    %229 = arith.addf %226, %228 : vector<8x256xf32>
    %c0_95 = arith.constant 0 : index
    %c0_96 = arith.constant 0 : index
    %230 = vector.load %arg3[%c0_95, %c0_96] : memref<128x256xf32, #tpu.memory_space<vmem>>, vector<128x256xf32>
    %cst_97 = arith.constant dense<0.000000e+00> : vector<8x256xf32>
    %231 = tpu.matmul %221, %230, %cst_97 {dimension_numbers = #tpu.dot_dimension_numbers<[1], [0], [0], [1], [0, 0, 1, 1], [], []>} : vector<8x128xf32>, vector<128x256xf32>, vector<8x256xf32> -> vector<8x256xf32>
    %232 = arith.addf %229, %231 : vector<8x256xf32>
    %233 = vector.extract_strided_slice %232 {offsets = [0, 0], sizes = [8, 128], strides = [1, 1]} : vector<8x256xf32> to vector<8x128xf32>
    %234 = vector.extract_strided_slice %232 {offsets = [0, 128], sizes = [8, 128], strides = [1, 1]} : vector<8x256xf32> to vector<8x128xf32>
    %235 = arith.negf %233 : vector<8x128xf32>
    %236 = math.exp %235 : vector<8x128xf32>
    %cst_98 = arith.constant 1.000000e+00 : f32
    %237 = vector.broadcast %cst_98 : f32 to vector<8x128xf32>
    %238 = arith.addf %237, %236 : vector<8x128xf32>
    %239 = arith.divf %237, %238 : vector<8x128xf32>
    %240 = arith.negf %234 : vector<8x128xf32>
    %241 = math.exp %240 : vector<8x128xf32>
    %cst_99 = arith.constant 1.000000e+00 : f32
    %242 = vector.broadcast %cst_99 : f32 to vector<8x128xf32>
    %243 = arith.addf %242, %241 : vector<8x128xf32>
    %244 = arith.divf %242, %243 : vector<8x128xf32>
    %c64_i32_100 = arith.constant 64 : i32
    %245 = tpu.dynamic_rotate %244 by %c64_i32_100 dim 1 : vector<8x128xf32>, i32 -> vector<8x128xf32>
    %cst_101 = arith.constant 2.000000e+00 : f32
    %246 = vector.broadcast %cst_101 : f32 to vector<8x128xf32>
    %247 = arith.mulf %246, %245 : vector<8x128xf32>
    %cst_102 = arith.constant 1.000000e+00 : f32
    %248 = vector.broadcast %cst_102 : f32 to vector<8x128xf32>
    %249 = arith.subf %247, %248 : vector<8x128xf32>
    %250 = arith.mulf %239, %208 : vector<8x128xf32>
    %251 = arith.mulf %244, %249 : vector<8x128xf32>
    %252 = arith.addf %250, %251 : vector<8x128xf32>
    %cst_103 = arith.constant 2.000000e+00 : f32
    %253 = vector.broadcast %cst_103 : f32 to vector<8x128xf32>
    %254 = arith.mulf %253, %252 : vector<8x128xf32>
    %255 = arith.negf %254 : vector<8x128xf32>
    %256 = math.exp %255 : vector<8x128xf32>
    %cst_104 = arith.constant 1.000000e+00 : f32
    %257 = vector.broadcast %cst_104 : f32 to vector<8x128xf32>
    %258 = arith.addf %257, %256 : vector<8x128xf32>
    %259 = arith.divf %257, %258 : vector<8x128xf32>
    %cst_105 = arith.constant 2.000000e+00 : f32
    %260 = vector.broadcast %cst_105 : f32 to vector<8x128xf32>
    %261 = arith.mulf %260, %259 : vector<8x128xf32>
    %cst_106 = arith.constant 1.000000e+00 : f32
    %262 = vector.broadcast %cst_106 : f32 to vector<8x128xf32>
    %263 = arith.subf %261, %262 : vector<8x128xf32>
    %c64_i32_107 = arith.constant 64 : i32
    %264 = tpu.dynamic_rotate %263 by %c64_i32_107 dim 1 : vector<8x128xf32>, i32 -> vector<8x128xf32>
    %265 = arith.mulf %239, %264 : vector<8x128xf32>
    %c0_108 = arith.constant 0 : index
    %c6 = arith.constant 6 : index
    %266 = vector.load %arg1[%c0_108, %c6] : memref<8x8xf32, #tpu.memory_space<vmem>>, vector<8x1xf32>
    %c0_109 = arith.constant 0 : index
    %c0_110 = arith.constant 0 : index
    %267 = vector.load %arg2[%c0_109, %c0_110] : memref<1x256xf32, #tpu.memory_space<vmem>>, vector<1x256xf32>
    %268 = vector.broadcast %266 : vector<8x1xf32> to vector<8x256xf32>
    %269 = vector.broadcast %267 : vector<1x256xf32> to vector<8x256xf32>
    %270 = arith.mulf %268, %269 : vector<8x256xf32>
    %c0_111 = arith.constant 0 : index
    %c0_112 = arith.constant 0 : index
    %271 = vector.load %arg4[%c0_111, %c0_112] : memref<1x256xf32, #tpu.memory_space<vmem>>, vector<1x256xf32>
    %272 = vector.broadcast %271 : vector<1x256xf32> to vector<8x256xf32>
    %273 = arith.addf %270, %272 : vector<8x256xf32>
    %c0_113 = arith.constant 0 : index
    %c0_114 = arith.constant 0 : index
    %274 = vector.load %arg3[%c0_113, %c0_114] : memref<128x256xf32, #tpu.memory_space<vmem>>, vector<128x256xf32>
    %cst_115 = arith.constant dense<0.000000e+00> : vector<8x256xf32>
    %275 = tpu.matmul %265, %274, %cst_115 {dimension_numbers = #tpu.dot_dimension_numbers<[1], [0], [0], [1], [0, 0, 1, 1], [], []>} : vector<8x128xf32>, vector<128x256xf32>, vector<8x256xf32> -> vector<8x256xf32>
    %276 = arith.addf %273, %275 : vector<8x256xf32>
    %277 = vector.extract_strided_slice %276 {offsets = [0, 0], sizes = [8, 128], strides = [1, 1]} : vector<8x256xf32> to vector<8x128xf32>
    %278 = vector.extract_strided_slice %276 {offsets = [0, 128], sizes = [8, 128], strides = [1, 1]} : vector<8x256xf32> to vector<8x128xf32>
    %279 = arith.negf %277 : vector<8x128xf32>
    %280 = math.exp %279 : vector<8x128xf32>
    %cst_116 = arith.constant 1.000000e+00 : f32
    %281 = vector.broadcast %cst_116 : f32 to vector<8x128xf32>
    %282 = arith.addf %281, %280 : vector<8x128xf32>
    %283 = arith.divf %281, %282 : vector<8x128xf32>
    %284 = arith.negf %278 : vector<8x128xf32>
    %285 = math.exp %284 : vector<8x128xf32>
    %cst_117 = arith.constant 1.000000e+00 : f32
    %286 = vector.broadcast %cst_117 : f32 to vector<8x128xf32>
    %287 = arith.addf %286, %285 : vector<8x128xf32>
    %288 = arith.divf %286, %287 : vector<8x128xf32>
    %c64_i32_118 = arith.constant 64 : i32
    %289 = tpu.dynamic_rotate %288 by %c64_i32_118 dim 1 : vector<8x128xf32>, i32 -> vector<8x128xf32>
    %cst_119 = arith.constant 2.000000e+00 : f32
    %290 = vector.broadcast %cst_119 : f32 to vector<8x128xf32>
    %291 = arith.mulf %290, %289 : vector<8x128xf32>
    %cst_120 = arith.constant 1.000000e+00 : f32
    %292 = vector.broadcast %cst_120 : f32 to vector<8x128xf32>
    %293 = arith.subf %291, %292 : vector<8x128xf32>
    %294 = arith.mulf %283, %252 : vector<8x128xf32>
    %295 = arith.mulf %288, %293 : vector<8x128xf32>
    %296 = arith.addf %294, %295 : vector<8x128xf32>
    %cst_121 = arith.constant 2.000000e+00 : f32
    %297 = vector.broadcast %cst_121 : f32 to vector<8x128xf32>
    %298 = arith.mulf %297, %296 : vector<8x128xf32>
    %299 = arith.negf %298 : vector<8x128xf32>
    %300 = math.exp %299 : vector<8x128xf32>
    %cst_122 = arith.constant 1.000000e+00 : f32
    %301 = vector.broadcast %cst_122 : f32 to vector<8x128xf32>
    %302 = arith.addf %301, %300 : vector<8x128xf32>
    %303 = arith.divf %301, %302 : vector<8x128xf32>
    %cst_123 = arith.constant 2.000000e+00 : f32
    %304 = vector.broadcast %cst_123 : f32 to vector<8x128xf32>
    %305 = arith.mulf %304, %303 : vector<8x128xf32>
    %cst_124 = arith.constant 1.000000e+00 : f32
    %306 = vector.broadcast %cst_124 : f32 to vector<8x128xf32>
    %307 = arith.subf %305, %306 : vector<8x128xf32>
    %c64_i32_125 = arith.constant 64 : i32
    %308 = tpu.dynamic_rotate %307 by %c64_i32_125 dim 1 : vector<8x128xf32>, i32 -> vector<8x128xf32>
    %309 = arith.mulf %283, %308 : vector<8x128xf32>
    %c0_126 = arith.constant 0 : index
    %c7 = arith.constant 7 : index
    %310 = vector.load %arg1[%c0_126, %c7] : memref<8x8xf32, #tpu.memory_space<vmem>>, vector<8x1xf32>
    %c0_127 = arith.constant 0 : index
    %c0_128 = arith.constant 0 : index
    %311 = vector.load %arg2[%c0_127, %c0_128] : memref<1x256xf32, #tpu.memory_space<vmem>>, vector<1x256xf32>
    %312 = vector.broadcast %310 : vector<8x1xf32> to vector<8x256xf32>
    %313 = vector.broadcast %311 : vector<1x256xf32> to vector<8x256xf32>
    %314 = arith.mulf %312, %313 : vector<8x256xf32>
    %c0_129 = arith.constant 0 : index
    %c0_130 = arith.constant 0 : index
    %315 = vector.load %arg4[%c0_129, %c0_130] : memref<1x256xf32, #tpu.memory_space<vmem>>, vector<1x256xf32>
    %316 = vector.broadcast %315 : vector<1x256xf32> to vector<8x256xf32>
    %317 = arith.addf %314, %316 : vector<8x256xf32>
    %c0_131 = arith.constant 0 : index
    %c0_132 = arith.constant 0 : index
    %318 = vector.load %arg3[%c0_131, %c0_132] : memref<128x256xf32, #tpu.memory_space<vmem>>, vector<128x256xf32>
    %cst_133 = arith.constant dense<0.000000e+00> : vector<8x256xf32>
    %319 = tpu.matmul %309, %318, %cst_133 {dimension_numbers = #tpu.dot_dimension_numbers<[1], [0], [0], [1], [0, 0, 1, 1], [], []>} : vector<8x128xf32>, vector<128x256xf32>, vector<8x256xf32> -> vector<8x256xf32>
    %320 = arith.addf %317, %319 : vector<8x256xf32>
    %321 = vector.extract_strided_slice %320 {offsets = [0, 0], sizes = [8, 128], strides = [1, 1]} : vector<8x256xf32> to vector<8x128xf32>
    %322 = vector.extract_strided_slice %320 {offsets = [0, 128], sizes = [8, 128], strides = [1, 1]} : vector<8x256xf32> to vector<8x128xf32>
    %323 = arith.negf %321 : vector<8x128xf32>
    %324 = math.exp %323 : vector<8x128xf32>
    %cst_134 = arith.constant 1.000000e+00 : f32
    %325 = vector.broadcast %cst_134 : f32 to vector<8x128xf32>
    %326 = arith.addf %325, %324 : vector<8x128xf32>
    %327 = arith.divf %325, %326 : vector<8x128xf32>
    %328 = arith.negf %322 : vector<8x128xf32>
    %329 = math.exp %328 : vector<8x128xf32>
    %cst_135 = arith.constant 1.000000e+00 : f32
    %330 = vector.broadcast %cst_135 : f32 to vector<8x128xf32>
    %331 = arith.addf %330, %329 : vector<8x128xf32>
    %332 = arith.divf %330, %331 : vector<8x128xf32>
    %c64_i32_136 = arith.constant 64 : i32
    %333 = tpu.dynamic_rotate %332 by %c64_i32_136 dim 1 : vector<8x128xf32>, i32 -> vector<8x128xf32>
    %cst_137 = arith.constant 2.000000e+00 : f32
    %334 = vector.broadcast %cst_137 : f32 to vector<8x128xf32>
    %335 = arith.mulf %334, %333 : vector<8x128xf32>
    %cst_138 = arith.constant 1.000000e+00 : f32
    %336 = vector.broadcast %cst_138 : f32 to vector<8x128xf32>
    %337 = arith.subf %335, %336 : vector<8x128xf32>
    %338 = arith.mulf %327, %296 : vector<8x128xf32>
    %339 = arith.mulf %332, %337 : vector<8x128xf32>
    %340 = arith.addf %338, %339 : vector<8x128xf32>
    %cst_139 = arith.constant 2.000000e+00 : f32
    %341 = vector.broadcast %cst_139 : f32 to vector<8x128xf32>
    %342 = arith.mulf %341, %340 : vector<8x128xf32>
    %343 = arith.negf %342 : vector<8x128xf32>
    %344 = math.exp %343 : vector<8x128xf32>
    %cst_140 = arith.constant 1.000000e+00 : f32
    %345 = vector.broadcast %cst_140 : f32 to vector<8x128xf32>
    %346 = arith.addf %345, %344 : vector<8x128xf32>
    %347 = arith.divf %345, %346 : vector<8x128xf32>
    %cst_141 = arith.constant 2.000000e+00 : f32
    %348 = vector.broadcast %cst_141 : f32 to vector<8x128xf32>
    %349 = arith.mulf %348, %347 : vector<8x128xf32>
    %cst_142 = arith.constant 1.000000e+00 : f32
    %350 = vector.broadcast %cst_142 : f32 to vector<8x128xf32>
    %351 = arith.subf %349, %350 : vector<8x128xf32>
    %c64_i32_143 = arith.constant 64 : i32
    %352 = tpu.dynamic_rotate %351 by %c64_i32_143 dim 1 : vector<8x128xf32>, i32 -> vector<8x128xf32>
    %353 = arith.mulf %327, %352 : vector<8x128xf32>
    %cst_144 = arith.constant 0.000000e+00 : f32
    %354 = vector.broadcast %cst_144 : f32 to vector<8x128xf32>
    %355 = arith.maximumf %353, %354 : vector<8x128xf32>
    %c0_145 = arith.constant 0 : index
    %c0_146 = arith.constant 0 : index
    %356 = vector.load %arg5[%c0_145, %c0_146] : memref<1x128xf32, #tpu.memory_space<vmem>>, vector<1x128xf32>
    %357 = vector.broadcast %356 : vector<1x128xf32> to vector<8x128xf32>
    %358 = arith.mulf %355, %357 : vector<8x128xf32>
    %cst_147 = arith.constant dense<0.000000e+00> : vector<8xf32>
    %359 = vector.multi_reduction <add>, %358, %cst_147 [1] : vector<8x128xf32> to vector<8xf32>
    %360 = vector.shape_cast %359 : vector<8xf32> to vector<8x1xf32>
    %c0_148 = arith.constant 0 : index
    %361 = memref.load %arg6[%c0_148] : memref<1xf32, #tpu.memory_space<smem>>
    %362 = vector.broadcast %361 : f32 to vector<8x1xf32>
    %363 = arith.addf %360, %362 : vector<8x1xf32>
    %c0_149 = arith.constant 0 : index
    %c0_150 = arith.constant 0 : index
    %364 = vector.load %arg7[%c0_149, %c0_150] : memref<8x1xf32, #tpu.memory_space<vmem>>, vector<8x1xf32>
    tpu.vector_store %arg7[%c0_149, %c0_150], %363 {strides = array<i32>} : memref<8x1xf32, #tpu.memory_space<vmem>>, vector<8x1xf32>,
    return
  }
  func.func @transform_0(%arg0: i32) -> (i32, i32) {
    %c0_i32 = arith.constant 0 : i32
    %c0_i32_0 = arith.constant 0 : i32
    return %arg0, %c0_i32 : i32, i32
  }
  func.func @transform_1(%arg0: i32) -> (i32, i32) {
    %c0_i32 = arith.constant 0 : i32
    %c0_i32_0 = arith.constant 0 : i32
    %c0_i32_1 = arith.constant 0 : i32
    return %c0_i32, %c0_i32_0 : i32, i32
  }
  func.func @transform_2(%arg0: i32) -> (i32, i32) {
    %c0_i32 = arith.constant 0 : i32
    %c0_i32_0 = arith.constant 0 : i32
    %c0_i32_1 = arith.constant 0 : i32
    return %c0_i32, %c0_i32_0 : i32, i32
  }
  func.func @transform_3(%arg0: i32) -> (i32, i32) {
    %c0_i32 = arith.constant 0 : i32
    %c0_i32_0 = arith.constant 0 : i32
    %c0_i32_1 = arith.constant 0 : i32
    return %c0_i32, %c0_i32_0 : i32, i32
  }
  func.func @transform_4(%arg0: i32) -> (i32, i32) {
    %c0_i32 = arith.constant 0 : i32
    %c0_i32_0 = arith.constant 0 : i32
    %c0_i32_1 = arith.constant 0 : i32
    return %c0_i32, %c0_i32_0 : i32, i32
  }
  func.func @transform_5(%arg0: i32) -> i32 {
    %c0_i32 = arith.constant 0 : i32
    %c0_i32_0 = arith.constant 0 : i32
    return %c0_i32 : i32
  }
  func.func @transform_6(%arg0: i32) -> (i32, i32) {
    %c0_i32 = arith.constant 0 : i32
    %c0_i32_0 = arith.constant 0 : i32
    return %arg0, %c0_i32 : i32, i32
  }
}

</mosaic_0001>

<bundles_post_ra>
// kernel: lstm_fc_forward.1
= control target key start
LH: loop header
LB: loop body
LE: loop exit
PB: predicated region body
PF: predicated region fallthrough
CT: control target
= control target key end

     0   :  { %12 = vsyncpa [#allocation4], 0  ;;  %s1451_s21 = smov [#allocation3]   ;;  %s1776_s0 = inlined_call_operand.vmem [shape: f32[8,8], index: 0, kind: input, shape index: {}]   ;;  %s1777_s1 = inlined_call_operand.vmem [shape: f32[1,256], index: 1, kind: input, shape index: {}]   ;;  %s1778_s2 = inlined_call_operand.hbm [shape: f32[128,256], index: 2, kind: input, shape index: {}]   ;;  %s1779_s3 = inlined_call_operand.vmem [shape: f32[1,256], index: 3, kind: input, shape index: {}]   ;;  %s1780_s4 = inlined_call_operand.vmem [shape: f32[1,128], index: 4, kind: input, shape index: {}]   ;;  %s1781_s5 = inlined_call_operand.<no memory space> [shape: f32[1], index: 5, kind: input, shape index: {}]   ;;  %s1782_s6 = inlined_call_operand.vmem [shape: f32[8,1], index: 6, kind: output, shape index: {}]  }
   0x1   :  { %s22_s22 = sshll.u32 %s1451_s21, 4  ;;  %s1427_s25 = scalar_lea.hbm %s1778_s2, 4096  ;;  %s23_s22 = int_to_ptr.vmem [resolvable:$true] %s22_s22 }
   0x2   :  { %p1428_p0 = scmp.ne.s32.totalorder %s1778_s2, %s1427_s25  ;;  %p1431_p1 = scmp.lt.u32.totalorder %s1427_s25, %s1778_s2 }
   0x4   :  { %p1433_p2 = pnand %p1431_p1, %p1428_p0 }
   0x6   :  { %1436 = shalt.err (!%p1433_p2)
}
   0x7   :  { %s1437_s30 = scalar_lea.vmem %s23_s22, 4096  ;;  %p1442_p4 = scmp.lt.s32.totalorder %s23_s22, %s23_s22 }
   0x8   :  { %p1438_p3 = scmp.ne.s32.totalorder %s23_s22, %s1437_s30  ;;  %p1443_p5 = scmp.lt.s32.totalorder %s1437_s30, %s1437_s30 }
   0xa   :  { %p1444_p6 = por %p1443_p5, %p1442_p4 }
   0xc   :  { %p1445_p7 = pnand %p1444_p6, %p1438_p3 }
   0xe   :  { %1448 = shalt.err (!%p1445_p7)
}
   0xf   :  { %s1452_s7 = smov 256   ;;  %s1453_s8 = smov 16  }
  0x10   :  { %28 = dma.hbm_to_vmem [thread:$0]  %s1778_s2, 4096, %s23_s22, [#allocation4], %s1452_s7, %s1452_s7, %s1453_s8  }
  0x11   :  { %1449 = dma.done.wait [#allocation4], 4096  }
  0x12   :  { %1450 = vsyncadd [#allocation4], 4294963200  ;;  %v1454_v0 = vmov 0.0   ;;  %v1455_v1 = vmov 0   ;;  %v73_v2 = vld [vmem:[#allocation3 + $0x8] sm:$0xff]  ;;  %v75_v3 = vld [vmem:[#allocation3 + $0x18] sm:$0xff]  ;;  %v46_v5 = vlaneseq }
  0x13   :  { %168 = vmatprep.mubr.f32.mxu0 %v1454_v0  ;;  %1323 = vset.pattern.permute.xlu0 %v1455_v1  ;;  %v72_v4 = vld [vmem:[#allocation3] sm:$0xff]  ;;  %v1513_v6 = vpack.c.bf16 %v75_v3, %v73_v2  ;;  %v74_v7 = vld [vmem:[#allocation3 + $0x10] sm:$0xff]  ;;  %v77_v8 = vld [vmem:[#allocation3 + $0x28] sm:$0xff]  ;;  %s1456_s14 = smov 64   ;;  %vm1006_vm0 = vcmask 7168  }
  0x14   :  { %280 = vmatprep.mubr.f32.mxu1 %v1454_v0  ;;  %v79_v9 = vld [vmem:[#allocation3 + $0x38] sm:$0xff]  ;;  %v1515_v10 = vpack.c.bf16 %v74_v7, %v72_v4  ;;  %v76_v12 = vld [vmem:[#allocation3 + $0x20] sm:$0xff]  ;;  %v78_v13 = vld [vmem:[#allocation3 + $0x30] sm:$0xff]  ;;  %v1524_v17 = vshrl.u32 %v46_v5, 7 }
  0x15   :  { %v1517_v11 = vpack.c.bf16 %v79_v9, %v77_v8  ;;  %v81_v14 = vld [vmem:[#allocation3 + $0x48] sm:$0xff]  ;;  %1055 = vmatprep.subr.bf16.mxu0 %v1513_v6  ;;  %v83_v15 = vld [vmem:[#allocation3 + $0x58] sm:$0xff]  ;;  %1087 = vmatprep.subr.bf16.mxu1 %v1513_v6  ;;  %v1522_v16 = vpack.c.bf16 %v78_v13, %v76_v12  ;;  %v80_v19 = vld [vmem:[#allocation3 + $0x40] sm:$0xff] }
  0x16   :  { %1057 = vmatpush1.bf16.msra.mxu0 %v1515_v10  ;;  %1089 = vmatpush1.bf16.msra.mxu1 %v1515_v10  ;;  %v1528_v18 = vpack.c.bf16 %v83_v15, %v81_v14  ;;  %v82_v20 = vld [vmem:[#allocation3 + $0x50] sm:$0xff]  ;;  %v85_v21 = vld [vmem:[#allocation3 + $0x68] sm:$0xff]  ;;  %v87_v22 = vld [vmem:[#allocation3 + $0x78] sm:$0xff]  ;;  %v48_v24 = vsub.s32 0, %v1524_v17  ;;  %v52_v56 = vsub.s32 1, %v1524_v17 }
  0x17   :  { %1059 = vmatprep.subr.bf16.mxu0 %v1517_v11  ;;  %1091 = vmatprep.subr.bf16.mxu1 %v1517_v11  ;;  %v1532_v23 = vpack.c.bf16 %v82_v20, %v80_v19  ;;  %v1537_v25 = vpack.c.bf16 %v87_v22, %v85_v21  ;;  %v84_v26 = vld [vmem:[#allocation3 + $0x60] sm:$0xff]  ;;  %v86_v27 = vld [vmem:[#allocation3 + $0x70] sm:$0xff]  ;;  %v89_v28 = vld [vmem:[#allocation3 + $0x88] sm:$0xff] }
  0x18   :  { %v91_v29 = vld [vmem:[#allocation3 + $0x98] sm:$0xff]  ;;  %v1543_v30 = vld [vmem:[%s1776_s0] sm:$0xff]  ;;  %v1552_v32 = vpack.c.bf16 %v86_v27, %v84_v26  ;;  %v90_v36 = vld [vmem:[#allocation3 + $0x90] sm:$0xff] }
  0x19   :  { %42 = vperm.xlu0 %1323, %v1543_v30   ;;  %v1549_v31 = vld [vmem:[%s1777_s1] sm:$0x3]  ;;  %v1561_v34 = vpack.c.bf16 %v91_v29, %v89_v28  ;;  %v93_v37 = vld [vmem:[#allocation3 + $0xa8] sm:$0xff]  ;;  %v95_v38 = vld [vmem:[#allocation3 + $0xb8] sm:$0xff] }
  0x1a   :  { %1061 = vmatpush1.bf16.msra.mxu0 %v1522_v16  ;;  %1093 = vmatpush1.bf16.msra.mxu1 %v1522_v16  ;;  %v1557_v33 = vrot.slane %v1549_v31, %v48_v24  ;;  %v88_v35 = vld [vmem:[#allocation3 + $0x80] sm:$0xff]  ;;  %v1569_v40 = vpack.c.bf16 %v95_v38, %v93_v37  ;;  %v94_v42 = vld [vmem:[#allocation3 + $0xb0] sm:$0xff]  ;;  %v97_v43 = vld [vmem:[#allocation3 + $0xc8] sm:$0xff]  ;;  %v1618_v57 = vrot.slane %v1549_v31, %v52_v56 }
  0x1b   :  { %1063 = vmatprep.subr.bf16.mxu0 %v1528_v18  ;;  %1095 = vmatprep.subr.bf16.mxu1 %v1528_v18  ;;  %v1565_v39 = vpack.c.bf16 %v90_v36, %v88_v35  ;;  %v92_v41 = vld [vmem:[#allocation3 + $0xa0] sm:$0xff]  ;;  %v99_v44 = vld [vmem:[#allocation3 + $0xd8] sm:$0xff]  ;;  %v98_v48 = vld [vmem:[#allocation3 + $0xd0] sm:$0xff]  ;;  %v1457_v36 = vmov 1  }
  0x1c   :  { %v1573_v45 = vpack.c.bf16 %v94_v42, %v92_v41  ;;  %v1577_v46 = vpack.c.bf16 %v99_v44, %v97_v43  ;;  %v96_v47 = vld [vmem:[#allocation3 + $0xc0] sm:$0xff]  ;;  %v101_v49 = vld [vmem:[#allocation3 + $0xe8] sm:$0xff]  ;;  %v103_v50 = vld [vmem:[#allocation3 + $0xf8] sm:$0xff]  ;;  %1324 = vset.pattern.permute.xlu1 %v1457_v36 }
  0x1d   :  { %v1581_v51 = vpack.c.bf16 %v98_v48, %v96_v47  ;;  %v1585_v52 = vpack.c.bf16 %v103_v50, %v101_v49  ;;  %v100_v53 = vld [vmem:[#allocation3 + $0xe0] sm:$0xff]  ;;  %v102_v54 = vld [vmem:[#allocation3 + $0xf0] sm:$0xff] }
  0x1e   :  { %1065 = vmatpush1.bf16.msra.mxu0 %v1532_v23  ;;  %1097 = vmatpush1.bf16.msra.mxu1 %v1532_v23  ;;  %v1589_v55 = vpack.c.bf16 %v102_v54, %v100_v53  ;;  %v58_v59 = vld [vmem:[%s1779_s3] sm:$0x3] }
  0x1f   :  { %1067 = vmatprep.subr.bf16.mxu0 %v1537_v25  ;;  %1099 = vmatprep.subr.bf16.mxu1 %v1537_v25  ;;  %v1624_v61 = vrot.slane %v58_v59, %v52_v56  ;;  %v1631_v9 = vrot.slane %v58_v59, %v48_v24 }
  0x22   :  { %1069 = vmatpush1.bf16.msra.mxu0 %v1552_v32  ;;  %1101 = vmatpush1.bf16.msra.mxu1 %v1552_v32 }
  0x23   :  { %1071 = vmatprep.subr.bf16.mxu0 %v1561_v34  ;;  %1103 = vmatprep.subr.bf16.mxu1 %v1561_v34 }
  0x26   :  { %1073 = vmatpush1.bf16.msra.mxu0 %v1565_v39  ;;  %1105 = vmatpush1.bf16.msra.mxu1 %v1565_v39 }
  0x27   :  { %1075 = vmatprep.subr.bf16.mxu0 %v1569_v40  ;;  %1107 = vmatprep.subr.bf16.mxu1 %v1569_v40 }
  0x2a   :  { %1077 = vmatpush1.bf16.msra.mxu0 %v1573_v45  ;;  %1109 = vmatpush1.bf16.msra.mxu1 %v1573_v45 }
  0x2b   :  { %1079 = vmatprep.subr.bf16.mxu0 %v1577_v46  ;;  %1111 = vmatprep.subr.bf16.mxu1 %v1577_v46 }
  0x2e   :  { %1081 = vmatpush1.bf16.msra.mxu0 %v1581_v51  ;;  %1113 = vmatpush1.bf16.msra.mxu1 %v1581_v51 }
  0x2f   :  { %1083 = vmatprep.subr.bf16.mxu0 %v1585_v52  ;;  %1115 = vmatprep.subr.bf16.mxu1 %v1585_v52 }
  0x32   :  { %1085 = vmatpush1.bf16.msra.mxu0 %v1589_v55  ;;  %1117 = vmatpush1.bf16.msra.mxu1 %v1589_v55 }
  0x33   :  { %1119 = vmatprep.subr.bf16.mxu0 %v1513_v6  ;;  %1151 = vmatprep.subr.bf16.mxu1 %v1513_v6 }
  0x35   :  { %169 = vmatmul.mubr.f32.vlgmr.msra.gmra.mrb[0].mxu0 %v1454_v0 }
  0x36   :  { %1121 = vmatpush1.bf16.msra.mxu0 %v1515_v10  ;;  %392 = vmatprep.mubr.f32.mxu0 %v1454_v0 }
  0x37   :  { %1123 = vmatprep.subr.bf16.mxu0 %v1517_v11 }
  0x3a   :  { %1125 = vmatpush1.bf16.msra.mxu0 %v1522_v16 }
  0x3b   :  { %1127 = vmatprep.subr.bf16.mxu0 %v1528_v18 }
  0x3e   :  { %1129 = vmatpush1.bf16.msra.mxu0 %v1532_v23 }
  0x3f   :  { %1131 = vmatprep.subr.bf16.mxu0 %v1537_v25 }
  0x42   :  { %1133 = vmatpush1.bf16.msra.mxu0 %v1552_v32 }
  0x43   :  { %1135 = vmatprep.subr.bf16.mxu0 %v1561_v34 }
  0x46   :  { %1137 = vmatpush1.bf16.msra.mxu0 %v1565_v39 }
  0x47   :  { %1139 = vmatprep.subr.bf16.mxu0 %v1569_v40 }
  0x4a   :  { %1141 = vmatpush1.bf16.msra.mxu0 %v1573_v45 }
  0x4b   :  { %1143 = vmatprep.subr.bf16.mxu0 %v1577_v46 }
  0x4e   :  { %1145 = vmatpush1.bf16.msra.mxu0 %v1581_v51 }
  0x4f   :  { %1147 = vmatprep.subr.bf16.mxu0 %v1585_v52 }
  0x52   :  { %1149 = vmatpush1.bf16.msra.mxu0 %v1589_v55 }
  0x53   :  { %1183 = vmatprep.subr.bf16.mxu0 %v1513_v6 }
  0x98   :  { %v43_v58 = vpop.permute.xlu0 %42 }
  0x99   :  { %v57_v60 = vmul.f32 %v1618_v57, %v43_v58  ;;  %v56_v8 = vmul.f32 %v1557_v33, %v43_v58 }
  0x9b   :  { %v71_v62 = vadd.f32 %v1624_v61, %v57_v60  ;;  %v70_v12 = vadd.f32 %v1631_v9, %v56_v8 }
 0x108   :  { %v170_v63 = vpop.f32.mrb[0].mxu0 }
 0x109   :  { %v172_v1 = vpop.f32.mrb[1].mxu0  ;;  %v175_v13 = vadd.f32 %v170_v63, %v70_v12 }
 0x10a   :  { %v176_v2 = vadd.f32 %v172_v1, %v71_v62 }
 0x10b   :  { %v1013_v14 = vmul.f32 -1.442695, %v175_v13 }
 0x10c   :  { %v1014_v3 = vmul.f32 -1.442695, %v176_v2 }
 0x10e   :  { %1331 = vpow2.f32 %v1014_v3 }
 0x118   :  { %v1332_v4 = vpop.eup %1331 }
 0x119   :  { %v186_v5 = vadd.f32 1.0, %v1332_v4 }
 0x11b   :  { %1333 = vrcp.f32 %v186_v5 }
 0x11c   :  { %1335 = vpow2.f32 %v1013_v14 }
 0x125   :  { %v1334_v7 = vpop.eup %1333 }
 0x126   :  { %189 = vrot.lane.b32.xlu0 %v1334_v7, %s1456_s14  ;;  %v1336_v15 = vpop.eup %1335 }
 0x127   :  { %v180_v19 = vadd.f32 1.0, %v1336_v15 }
 0x129   :  { %1337 = vrcp.f32 %v180_v19 }
 0x133   :  { %v1338_v22 = vpop.eup %1337 }
 0x134   :  { %v193_v27 = vmul.f32 0.0, %v1338_v22 }
 0x198   :  { %v190_v20 = vpop.permute.xlu0 %189 }
 0x199   :  { %v191_v21 = vmul.f32 2.0, %v190_v20 }
 0x19b   :  { %v1015_v26 = vadd.f32 -1.0, %v191_v21 }
 0x19d   :  { %v194_v28 = vmul.f32 %v1334_v7, %v1015_v26 }
 0x19f   :  { %v195_v29 = vadd.f32 %v194_v28, %v193_v27 }
 0x1a1   :  { %v1016_v31 = vmul.f32 -2.0, %v195_v29 }
 0x1a3   :  { %v198_v35 = vmul.f32 1.442695, %v1016_v31 }
 0x1a5   :  { %1339 = vpow2.f32 %v198_v35 }
 0x1af   :  { %v1340_v17 = vpop.eup %1339 }
 0x1b0   :  { %v200_v24 = vadd.f32 1.0, %v1340_v17 }
 0x1b2   :  { %1341 = vrcp.f32 %v200_v24 }
 0x1bc   :  { %v1342_v37 = vpop.eup %1341 }
 0x1bd   :  { %v203_v38 = vmul.f32 2.0, %v1342_v37 }
 0x1bf   :  { %v1017_v41 = vadd.f32 -1.0, %v203_v38 }
 0x1c1   :  { %205 = vrot.lane.b32.xlu1 %v1017_v41, %s1456_s14 }
 0x1c5   :  { %209 = vperm.xlu1 %1324, %v1543_v30  }
 0x233   :  { %v206_v42 = vpop.permute.xlu1 %205 }
 0x234   :  { %v207_v43 = vmul.f32 %v1338_v22, %v206_v42  ;;  %v1458_v22 = vmov 2  }
 0x235   :  { %1325 = vset.pattern.permute.xlu0 %v1458_v22 }
 0x236   :  { %281 = vmatmul.mubr.f32.vlgmr.msra.gmra.mrb[0].mxu1 %v207_v43 }
 0x237   :  { %1153 = vmatpush1.bf16.msra.mxu1 %v1515_v10  ;;  %504 = vmatprep.mubr.f32.mxu1 %v1454_v0 }
 0x238   :  { %1155 = vmatprep.subr.bf16.mxu1 %v1517_v11 }
 0x23b   :  { %1157 = vmatpush1.bf16.msra.mxu1 %v1522_v16 }
 0x23c   :  { %1159 = vmatprep.subr.bf16.mxu1 %v1528_v18 }
 0x23f   :  { %1161 = vmatpush1.bf16.msra.mxu1 %v1532_v23 }
 0x240   :  { %1163 = vmatprep.subr.bf16.mxu1 %v1537_v25 }
 0x243   :  { %1165 = vmatpush1.bf16.msra.mxu1 %v1552_v32 }
 0x244   :  { %1167 = vmatprep.subr.bf16.mxu1 %v1561_v34  ;;  %v210_v44 = vpop.permute.xlu1 %209 }
 0x245   :  { %v213_v47 = vmul.f32 %v210_v44, %v1618_v57  ;;  %v212_v60 = vmul.f32 %v210_v44, %v1557_v33 }
 0x247   :  { %1169 = vmatpush1.bf16.msra.mxu1 %v1565_v39  ;;  %v215_v48 = vadd.f32 %v213_v47, %v1624_v61  ;;  %v214_v62 = vadd.f32 %v212_v60, %v1631_v9 }
 0x248   :  { %1171 = vmatprep.subr.bf16.mxu1 %v1569_v40 }
 0x24b   :  { %1173 = vmatpush1.bf16.msra.mxu1 %v1573_v45 }
 0x24c   :  { %1175 = vmatprep.subr.bf16.mxu1 %v1577_v46 }
 0x24f   :  { %1177 = vmatpush1.bf16.msra.mxu1 %v1581_v51 }
 0x250   :  { %1179 = vmatprep.subr.bf16.mxu1 %v1585_v52 }
 0x253   :  { %1181 = vmatpush1.bf16.msra.mxu1 %v1589_v55 }
 0x254   :  { %1215 = vmatprep.subr.bf16.mxu1 %v1513_v6 }
 0x309   :  { %v282_v49 = vpop.f32.mrb[0].mxu1 }
 0x30a   :  { %v284_v50 = vpop.f32.mrb[1].mxu1  ;;  %v287_v63 = vadd.f32 %v282_v49, %v214_v62 }
 0x30b   :  { %v288_v53 = vadd.f32 %v284_v50, %v215_v48 }
 0x30c   :  { %v1018_v1 = vmul.f32 -1.442695, %v287_v63 }
 0x30d   :  { %v1019_v54 = vmul.f32 -1.442695, %v288_v53 }
 0x30f   :  { %1343 = vpow2.f32 %v1019_v54 }
 0x319   :  { %v1344_v56 = vpop.eup %1343 }
 0x31a   :  { %v298_v58 = vadd.f32 1.0, %v1344_v56 }
 0x31c   :  { %1345 = vrcp.f32 %v298_v58 }
 0x31d   :  { %1347 = vpow2.f32 %v1018_v1 }
 0x326   :  { %v1346_v59 = vpop.eup %1345 }
 0x327   :  { %301 = vrot.lane.b32.xlu0 %v1346_v59, %s1456_s14  ;;  %v1348_v2 = vpop.eup %1347 }
 0x328   :  { %v292_v3 = vadd.f32 1.0, %v1348_v2 }
 0x32a   :  { %1349 = vrcp.f32 %v292_v3 }
 0x32b   :  { %321 = vperm.xlu0 %1325, %v1543_v30  }
 0x334   :  { %v1350_v7 = vpop.eup %1349 }
 0x335   :  { %v305_v12 = vmul.f32 %v1350_v7, %v195_v29 }
 0x399   :  { %v302_v4 = vpop.permute.xlu0 %301 }
 0x39a   :  { %v303_v5 = vmul.f32 2.0, %v302_v4 }
 0x39c   :  { %v1020_v8 = vadd.f32 -1.0, %v303_v5 }
 0x39e   :  { %v306_v13 = vmul.f32 %v1346_v59, %v1020_v8 }
 0x3a0   :  { %v307_v14 = vadd.f32 %v306_v13, %v305_v12 }
 0x3a2   :  { %v1021_v15 = vmul.f32 -2.0, %v307_v14 }
 0x3a4   :  { %v310_v19 = vmul.f32 1.442695, %v1021_v15 }
 0x3a6   :  { %1351 = vpow2.f32 %v310_v19 }
 0x3aa   :  { %v322_v29 = vpop.permute.xlu0 %321 }
 0x3ab   :  { %v325_v17 = vmul.f32 %v322_v29, %v1618_v57  ;;  %v324_v47 = vmul.f32 %v322_v29, %v1557_v33 }
 0x3ad   :  { %v327_v24 = vadd.f32 %v325_v17, %v1624_v61  ;;  %v326_v48 = vadd.f32 %v324_v47, %v1631_v9 }
 0x3b0   :  { %v1352_v20 = vpop.eup %1351 }
 0x3b1   :  { %v312_v21 = vadd.f32 1.0, %v1352_v20 }
 0x3b3   :  { %1353 = vrcp.f32 %v312_v21 }
 0x3bd   :  { %v1354_v26 = vpop.eup %1353 }
 0x3be   :  { %v315_v27 = vmul.f32 2.0, %v1354_v26 }
 0x3c0   :  { %v1022_v28 = vadd.f32 -1.0, %v315_v27 }
 0x3c2   :  { %317 = vrot.lane.b32.xlu1 %v1022_v28, %s1456_s14 }
 0x434   :  { %v318_v31 = vpop.permute.xlu1 %317 }
 0x435   :  { %v319_v35 = vmul.f32 %v1350_v7, %v318_v31  ;;  %v1459_v7 = vmov 3  }
 0x436   :  { %1326 = vset.pattern.permute.xlu0 %v1459_v7 }
 0x437   :  { %393 = vmatmul.mubr.f32.vlgmr.msra.gmra.mrb[2].mxu0 %v319_v35  ;;  %433 = vperm.xlu0 %1326, %v1543_v30  }
 0x438   :  { %1185 = vmatpush1.bf16.msra.mxu0 %v1515_v10  ;;  %616 = vmatprep.mubr.f32.mxu0 %v1454_v0 }
 0x439   :  { %1187 = vmatprep.subr.bf16.mxu0 %v1517_v11 }
 0x43c   :  { %1189 = vmatpush1.bf16.msra.mxu0 %v1522_v16 }
 0x43d   :  { %1191 = vmatprep.subr.bf16.mxu0 %v1528_v18 }
 0x440   :  { %1193 = vmatpush1.bf16.msra.mxu0 %v1532_v23 }
 0x441   :  { %1195 = vmatprep.subr.bf16.mxu0 %v1537_v25 }
 0x444   :  { %1197 = vmatpush1.bf16.msra.mxu0 %v1552_v32 }
 0x445   :  { %1199 = vmatprep.subr.bf16.mxu0 %v1561_v34 }
 0x448   :  { %1201 = vmatpush1.bf16.msra.mxu0 %v1565_v39 }
 0x449   :  { %1203 = vmatprep.subr.bf16.mxu0 %v1569_v40 }
 0x44c   :  { %1205 = vmatpush1.bf16.msra.mxu0 %v1573_v45 }
 0x44d   :  { %1207 = vmatprep.subr.bf16.mxu0 %v1577_v46 }
 0x450   :  { %1209 = vmatpush1.bf16.msra.mxu0 %v1581_v51 }
 0x451   :  { %1211 = vmatprep.subr.bf16.mxu0 %v1585_v52 }
 0x454   :  { %1213 = vmatpush1.bf16.msra.mxu0 %v1589_v55 }
 0x455   :  { %1247 = vmatprep.subr.bf16.mxu0 %v1513_v6 }
 0x50a   :  { %v394_v36 = vpop.f32.mrb[2].mxu0 }
 0x50b   :  { %v396_v37 = vpop.f32.mrb[3].mxu0  ;;  %v399_v49 = vadd.f32 %v394_v36, %v326_v48 }
 0x50c   :  { %v400_v38 = vadd.f32 %v396_v37, %v327_v24 }
 0x50d   :  { %v1023_v50 = vmul.f32 -1.442695, %v399_v49 }
 0x50e   :  { %v1024_v41 = vmul.f32 -1.442695, %v400_v38 }
 0x510   :  { %1355 = vpow2.f32 %v1024_v41 }
 0x51a   :  { %v1356_v42 = vpop.eup %1355 }
 0x51b   :  { %v410_v43 = vadd.f32 1.0, %v1356_v42 }
 0x51d   :  { %1357 = vrcp.f32 %v410_v43 }
 0x51e   :  { %1359 = vpow2.f32 %v1023_v50 }
 0x527   :  { %v1358_v44 = vpop.eup %1357 }
 0x528   :  { %413 = vrot.lane.b32.xlu1 %v1358_v44, %s1456_s14  ;;  %v1360_v53 = vpop.eup %1359 }
 0x529   :  { %v404_v54 = vadd.f32 1.0, %v1360_v53 }
 0x52b   :  { %1361 = vrcp.f32 %v404_v54 }
 0x535   :  { %v1362_v59 = vpop.eup %1361 }
 0x536   :  { %v417_v62 = vmul.f32 %v1362_v59, %v307_v14  ;;  %v434_v14 = vpop.permute.xlu0 %433 }
 0x537   :  { %v437_v20 = vmul.f32 %v434_v14, %v1618_v57  ;;  %v436_v17 = vmul.f32 %v434_v14, %v1557_v33 }
 0x539   :  { %v439_v21 = vadd.f32 %v437_v20, %v1624_v61 }
 0x59a   :  { %v414_v56 = vpop.permute.xlu1 %413 }
 0x59b   :  { %v415_v58 = vmul.f32 2.0, %v414_v56 }
 0x59d   :  { %v1025_v60 = vadd.f32 -1.0, %v415_v58  ;;  %v1460_v58 = vmov 4  }
 0x59e   :  { %1327 = vset.pattern.permute.xlu0 %v1460_v58 }
 0x59f   :  { %v418_v63 = vmul.f32 %v1358_v44, %v1025_v60  ;;  %545 = vperm.xlu0 %1327, %v1543_v30  }
 0x5a1   :  { %v419_v1 = vadd.f32 %v418_v63, %v417_v62 }
 0x5a3   :  { %v1026_v2 = vmul.f32 -2.0, %v419_v1 }
 0x5a5   :  { %v422_v3 = vmul.f32 1.442695, %v1026_v2 }
 0x5a7   :  { %1363 = vpow2.f32 %v422_v3 }
 0x5b1   :  { %v1364_v4 = vpop.eup %1363 }
 0x5b2   :  { %v424_v5 = vadd.f32 1.0, %v1364_v4 }
 0x5b4   :  { %1365 = vrcp.f32 %v424_v5 }
 0x5be   :  { %v1366_v8 = vpop.eup %1365 }
 0x5bf   :  { %v427_v12 = vmul.f32 2.0, %v1366_v8 }
 0x5c1   :  { %v1027_v13 = vadd.f32 -1.0, %v427_v12 }
 0x5c3   :  { %429 = vrot.lane.b32.xlu1 %v1027_v13, %s1456_s14 }
 0x635   :  { %v430_v15 = vpop.permute.xlu1 %429 }
 0x636   :  { %v431_v19 = vmul.f32 %v1362_v59, %v430_v15 }
 0x638   :  { %505 = vmatmul.mubr.f32.vlgmr.msra.gmra.mrb[2].mxu1 %v431_v19 }
 0x639   :  { %1217 = vmatpush1.bf16.msra.mxu1 %v1515_v10  ;;  %728 = vmatprep.mubr.f32.mxu1 %v1454_v0 }
 0x63a   :  { %1219 = vmatprep.subr.bf16.mxu1 %v1517_v11 }
 0x63d   :  { %1221 = vmatpush1.bf16.msra.mxu1 %v1522_v16 }
 0x63e   :  { %1223 = vmatprep.subr.bf16.mxu1 %v1528_v18 }
 0x641   :  { %1225 = vmatpush1.bf16.msra.mxu1 %v1532_v23 }
 0x642   :  { %1227 = vmatprep.subr.bf16.mxu1 %v1537_v25 }
 0x645   :  { %1229 = vmatpush1.bf16.msra.mxu1 %v1552_v32 }
 0x646   :  { %1231 = vmatprep.subr.bf16.mxu1 %v1561_v34 }
 0x649   :  { %1233 = vmatpush1.bf16.msra.mxu1 %v1565_v39 }
 0x64a   :  { %1235 = vmatprep.subr.bf16.mxu1 %v1569_v40 }
 0x64d   :  { %1237 = vmatpush1.bf16.msra.mxu1 %v1573_v45 }
 0x64e   :  { %1239 = vmatprep.subr.bf16.mxu1 %v1577_v46 }
 0x651   :  { %1241 = vmatpush1.bf16.msra.mxu1 %v1581_v51 }
 0x652   :  { %1243 = vmatprep.subr.bf16.mxu1 %v1585_v52 }
 0x655   :  { %1245 = vmatpush1.bf16.msra.mxu1 %v1589_v55 }
 0x656   :  { %1279 = vmatprep.subr.bf16.mxu1 %v1513_v6  ;;  %v438_v6 = vadd.f32 %v436_v17, %v1631_v9 }
 0x70b   :  { %v506_v22 = vpop.f32.mrb[2].mxu1 }
 0x70c   :  { %v508_v26 = vpop.f32.mrb[3].mxu1  ;;  %v511_v24 = vadd.f32 %v506_v22, %v438_v6 }
 0x70d   :  { %v512_v27 = vadd.f32 %v508_v26, %v439_v21 }
 0x70e   :  { %v1028_v36 = vmul.f32 -1.442695, %v511_v24 }
 0x70f   :  { %v1029_v28 = vmul.f32 -1.442695, %v512_v27 }
 0x711   :  { %1367 = vpow2.f32 %v1029_v28 }
 0x71b   :  { %v1368_v31 = vpop.eup %1367 }
 0x71c   :  { %v522_v35 = vadd.f32 1.0, %v1368_v31 }
 0x71e   :  { %1369 = vrcp.f32 %v522_v35 }
 0x71f   :  { %1371 = vpow2.f32 %v1028_v36 }
 0x728   :  { %v1370_v29 = vpop.eup %1369 }
 0x729   :  { %525 = vrot.lane.b32.xlu1 %v1370_v29, %s1456_s14  ;;  %v1372_v37 = vpop.eup %1371 }
 0x72a   :  { %v516_v38 = vadd.f32 1.0, %v1372_v37 }
 0x72c   :  { %1373 = vrcp.f32 %v516_v38 }
 0x736   :  { %v1374_v43 = vpop.eup %1373 }
 0x737   :  { %v529_v47 = vmul.f32 %v1374_v43, %v419_v1  ;;  %v546_v1 = vpop.permute.xlu0 %545 }
 0x738   :  { %v549_v3 = vmul.f32 %v546_v1, %v1618_v57  ;;  %v548_v14 = vmul.f32 %v546_v1, %v1557_v33 }
 0x73a   :  { %v551_v4 = vadd.f32 %v549_v3, %v1624_v61  ;;  %v550_v20 = vadd.f32 %v548_v14, %v1631_v9  ;;  %v1462_v3 = vmov 6  }
 0x79b   :  { %v526_v41 = vpop.permute.xlu1 %525 }
 0x79c   :  { %v527_v42 = vmul.f32 2.0, %v526_v41 }
 0x79e   :  { %v1030_v44 = vadd.f32 -1.0, %v527_v42  ;;  %v1461_v42 = vmov 5  }
 0x79f   :  { %1328 = vset.pattern.permute.xlu0 %v1461_v42 }
 0x7a0   :  { %v530_v48 = vmul.f32 %v1370_v29, %v1030_v44  ;;  %657 = vperm.xlu0 %1328, %v1543_v30  }
 0x7a2   :  { %v531_v49 = vadd.f32 %v530_v48, %v529_v47 }
 0x7a4   :  { %v1031_v50 = vmul.f32 -2.0, %v531_v49  ;;  %1329 = vset.pattern.permute.xlu0 %v1462_v3 }
 0x7a5   :  { %769 = vperm.xlu0 %1329, %v1543_v30  }
 0x7a6   :  { %v534_v53 = vmul.f32 1.442695, %v1031_v50 }
 0x7a8   :  { %1375 = vpow2.f32 %v534_v53 }
 0x7b2   :  { %v1376_v54 = vpop.eup %1375 }
 0x7b3   :  { %v536_v56 = vadd.f32 1.0, %v1376_v54 }
 0x7b5   :  { %1377 = vrcp.f32 %v536_v56 }
 0x7bf   :  { %v1378_v59 = vpop.eup %1377 }
 0x7c0   :  { %v539_v60 = vmul.f32 2.0, %v1378_v59 }
 0x7c2   :  { %v1032_v62 = vadd.f32 -1.0, %v539_v60 }
 0x7c4   :  { %541 = vrot.lane.b32.xlu1 %v1032_v62, %s1456_s14 }
 0x836   :  { %v542_v63 = vpop.permute.xlu1 %541 }
 0x837   :  { %v543_v2 = vmul.f32 %v1374_v43, %v542_v63 }
 0x839   :  { %617 = vmatmul.mubr.f32.vlgmr.msra.gmra.mrb[4].mxu0 %v543_v2 }
 0x83a   :  { %1249 = vmatpush1.bf16.msra.mxu0 %v1515_v10  ;;  %840 = vmatprep.mubr.f32.mxu0 %v1454_v0 }
 0x83b   :  { %1251 = vmatprep.subr.bf16.mxu0 %v1517_v11 }
 0x83e   :  { %1253 = vmatpush1.bf16.msra.mxu0 %v1522_v16 }
 0x83f   :  { %1255 = vmatprep.subr.bf16.mxu0 %v1528_v18 }
 0x842   :  { %1257 = vmatpush1.bf16.msra.mxu0 %v1532_v23 }
 0x843   :  { %1259 = vmatprep.subr.bf16.mxu0 %v1537_v25 }
 0x846   :  { %1261 = vmatpush1.bf16.msra.mxu0 %v1552_v32 }
 0x847   :  { %1263 = vmatprep.subr.bf16.mxu0 %v1561_v34 }
 0x84a   :  { %1265 = vmatpush1.bf16.msra.mxu0 %v1565_v39 }
 0x84b   :  { %1267 = vmatprep.subr.bf16.mxu0 %v1569_v40 }
 0x84e   :  { %1269 = vmatpush1.bf16.msra.mxu0 %v1573_v45 }
 0x84f   :  { %1271 = vmatprep.subr.bf16.mxu0 %v1577_v46 }
 0x852   :  { %1273 = vmatpush1.bf16.msra.mxu0 %v1581_v51 }
 0x853   :  { %1275 = vmatprep.subr.bf16.mxu0 %v1585_v52 }
 0x856   :  { %1277 = vmatpush1.bf16.msra.mxu0 %v1589_v55 }
 0x90c   :  { %v618_v5 = vpop.f32.mrb[4].mxu0 }
 0x90d   :  { %v620_v7 = vpop.f32.mrb[5].mxu0  ;;  %v623_v21 = vadd.f32 %v618_v5, %v550_v20 }
 0x90e   :  { %v624_v8 = vadd.f32 %v620_v7, %v551_v4 }
 0x90f   :  { %v1033_v22 = vmul.f32 -1.442695, %v623_v21 }
 0x910   :  { %v1034_v12 = vmul.f32 -1.442695, %v624_v8 }
 0x912   :  { %1379 = vpow2.f32 %v1034_v12 }
 0x91c   :  { %v1380_v13 = vpop.eup %1379 }
 0x91d   :  { %v634_v15 = vadd.f32 1.0, %v1380_v13 }
 0x91f   :  { %1381 = vrcp.f32 %v634_v15 }
 0x920   :  { %1383 = vpow2.f32 %v1033_v22 }
 0x929   :  { %v1382_v19 = vpop.eup %1381 }
 0x92a   :  { %637 = vrot.lane.b32.xlu1 %v1382_v19, %s1456_s14  ;;  %v1384_v26 = vpop.eup %1383 }
 0x92b   :  { %v628_v27 = vadd.f32 1.0, %v1384_v26 }
 0x92d   :  { %1385 = vrcp.f32 %v628_v27 }
 0x937   :  { %v1386_v35 = vpop.eup %1385 }
 0x938   :  { %v641_v17 = vmul.f32 %v1386_v35, %v531_v49 }
 0x99c   :  { %v638_v28 = vpop.permute.xlu1 %637 }
 0x99d   :  { %v639_v31 = vmul.f32 2.0, %v638_v28 }
 0x99f   :  { %v1035_v29 = vadd.f32 -1.0, %v639_v31 }
 0x9a1   :  { %v642_v6 = vmul.f32 %v1382_v19, %v1035_v29 }
 0x9a3   :  { %v643_v24 = vadd.f32 %v642_v6, %v641_v17 }
 0x9a5   :  { %v1036_v36 = vmul.f32 -2.0, %v643_v24 }
 0x9a7   :  { %v646_v37 = vmul.f32 1.442695, %v1036_v36 }
 0x9a9   :  { %1387 = vpow2.f32 %v646_v37 }
 0x9b3   :  { %v1388_v38 = vpop.eup %1387 }
 0x9b4   :  { %v648_v41 = vadd.f32 1.0, %v1388_v38 }
 0x9b6   :  { %1389 = vrcp.f32 %v648_v41 }
 0x9c0   :  { %v1390_v43 = vpop.eup %1389 }
 0x9c1   :  { %v651_v44 = vmul.f32 2.0, %v1390_v43 }
 0x9c3   :  { %v1037_v47 = vadd.f32 -1.0, %v651_v44 }
 0x9c5   :  { %653 = vrot.lane.b32.xlu1 %v1037_v47, %s1456_s14 }
 0xa37   :  { %v654_v48 = vpop.permute.xlu1 %653 }
 0xa38   :  { %v655_v50 = vmul.f32 %v1386_v35, %v654_v48 }
 0xa3a   :  { %729 = vmatmul.mubr.f32.vlgmr.msra.gmra.mrb[4].mxu1 %v655_v50 }
 0xa3b   :  { %1281 = vmatpush1.bf16.msra.mxu1 %v1515_v10  ;;  %952 = vmatprep.mubr.f32.mxu1 %v1454_v0  ;;  %v658_v0 = vpop.permute.xlu0 %657 }
 0xa3c   :  { %1283 = vmatprep.subr.bf16.mxu1 %v1517_v11  ;;  %v661_v10 = vmul.f32 %v658_v0, %v1618_v57 }
 0xa3e   :  { %v663_v11 = vadd.f32 %v661_v10, %v1624_v61  ;;  %v1463_v10 = vmov 7  }
 0xa3f   :  { %1285 = vmatpush1.bf16.msra.mxu1 %v1522_v16  ;;  %v770_v13 = vpop.permute.xlu0 %769  ;;  %1330 = vset.pattern.permute.xlu0 %v1463_v10 }
 0xa40   :  { %1287 = vmatprep.subr.bf16.mxu1 %v1528_v18  ;;  %v773_v15 = vmul.f32 %v770_v13, %v1618_v57  ;;  %v772_v31 = vmul.f32 %v770_v13, %v1557_v33  ;;  %881 = vperm.xlu0 %1330, %v1543_v30  }
 0xa42   :  { %v775_v19 = vadd.f32 %v773_v15, %v1624_v61  ;;  %v774_v35 = vadd.f32 %v772_v31, %v1631_v9  ;;  %v1053_v15 = vld [vmem:[%s1780_s4] ss:$0 sm:$0xff] }
 0xa43   :  { %1289 = vmatpush1.bf16.msra.mxu1 %v1532_v23 }
 0xa44   :  { %1291 = vmatprep.subr.bf16.mxu1 %v1537_v25 }
 0xa47   :  { %1293 = vmatpush1.bf16.msra.mxu1 %v1552_v32 }
 0xa48   :  { %1295 = vmatprep.subr.bf16.mxu1 %v1561_v34 }
 0xa4b   :  { %1297 = vmatpush1.bf16.msra.mxu1 %v1565_v39 }
 0xa4c   :  { %1299 = vmatprep.subr.bf16.mxu1 %v1569_v40  ;;  %v660_v40 = vmul.f32 %v658_v0, %v1557_v33 }
 0xa4f   :  { %1301 = vmatpush1.bf16.msra.mxu1 %v1573_v45  ;;  %v662_v45 = vadd.f32 %v660_v40, %v1631_v9 }
 0xa50   :  { %1303 = vmatprep.subr.bf16.mxu1 %v1577_v46 }
 0xa53   :  { %1305 = vmatpush1.bf16.msra.mxu1 %v1581_v51 }
 0xa54   :  { %1307 = vmatprep.subr.bf16.mxu1 %v1585_v52 }
 0xa57   :  { %1309 = vmatpush1.bf16.msra.mxu1 %v1589_v55 }
 0xb0d   :  { %v730_v16 = vpop.f32.mrb[4].mxu1 }
 0xb0e   :  { %v732_v18 = vpop.f32.mrb[5].mxu1  ;;  %v735_v46 = vadd.f32 %v730_v16, %v662_v45 }
 0xb0f   :  { %v736_v23 = vadd.f32 %v732_v18, %v663_v11 }
 0xb10   :  { %v1038_v51 = vmul.f32 -1.442695, %v735_v46 }
 0xb11   :  { %v1039_v25 = vmul.f32 -1.442695, %v736_v23 }
 0xb13   :  { %1391 = vpow2.f32 %v1039_v25 }
 0xb1d   :  { %v1392_v32 = vpop.eup %1391 }
 0xb1e   :  { %v746_v34 = vadd.f32 1.0, %v1392_v32  ;;  %v882_v32 = vpop.permute.xlu0 %881 }
 0xb20   :  { %1393 = vrcp.f32 %v746_v34  ;;  %v885_v34 = vmul.f32 %v882_v32, %v1618_v57 }
 0xb21   :  { %1395 = vpow2.f32 %v1038_v51 }
 0xb2a   :  { %v1394_v39 = vpop.eup %1393 }
 0xb2b   :  { %749 = vrot.lane.b32.xlu1 %v1394_v39, %s1456_s14  ;;  %v1396_v52 = vpop.eup %1395 }
 0xb2c   :  { %v740_v55 = vadd.f32 1.0, %v1396_v52 }
 0xb2e   :  { %1397 = vrcp.f32 %v740_v55 }
 0xb38   :  { %v1398_v54 = vpop.eup %1397 }
 0xb39   :  { %v753_v58 = vmul.f32 %v1398_v54, %v643_v24 }
 0xb9d   :  { %v750_v49 = vpop.permute.xlu1 %749 }
 0xb9e   :  { %v751_v53 = vmul.f32 2.0, %v750_v49  ;;  %v884_v49 = vmul.f32 %v882_v32, %v1557_v33 }
 0xba0   :  { %v1040_v56 = vadd.f32 -1.0, %v751_v53  ;;  %v886_v53 = vadd.f32 %v884_v49, %v1631_v9 }
 0xba2   :  { %v754_v59 = vmul.f32 %v1394_v39, %v1040_v56  ;;  %v887_v39 = vadd.f32 %v885_v34, %v1624_v61 }
 0xba4   :  { %v755_v60 = vadd.f32 %v754_v59, %v753_v58 }
 0xba6   :  { %v1041_v62 = vmul.f32 -2.0, %v755_v60 }
 0xba8   :  { %v758_v63 = vmul.f32 1.442695, %v1041_v62 }
 0xbaa   :  { %1399 = vpow2.f32 %v758_v63 }
 0xbb4   :  { %v1400_v2 = vpop.eup %1399 }
 0xbb5   :  { %v760_v1 = vadd.f32 1.0, %v1400_v2 }
 0xbb7   :  { %1401 = vrcp.f32 %v760_v1 }
 0xbc1   :  { %v1402_v4 = vpop.eup %1401 }
 0xbc2   :  { %v763_v5 = vmul.f32 2.0, %v1402_v4 }
 0xbc4   :  { %v1042_v7 = vadd.f32 -1.0, %v763_v5 }
 0xbc6   :  { %765 = vrot.lane.b32.xlu1 %v1042_v7, %s1456_s14 }
 0xc38   :  { %v766_v8 = vpop.permute.xlu1 %765 }
 0xc39   :  { %v767_v12 = vmul.f32 %v1398_v54, %v766_v8 }
 0xc3b   :  { %841 = vmatmul.mubr.f32.vlgmr.msra.gmra.mrb[6].mxu0 %v767_v12 }
 0xd0e   :  { %v842_v14 = vpop.f32.mrb[6].mxu0 }
 0xd0f   :  { %v844_v20 = vpop.f32.mrb[7].mxu0  ;;  %v847_v29 = vadd.f32 %v842_v14, %v774_v35 }
 0xd10   :  { %v848_v21 = vadd.f32 %v844_v20, %v775_v19  ;;  %v1004_v20 = vstv %s1781_s5 }
 0xd11   :  { %v1043_v17 = vmul.f32 -1.442695, %v847_v29 }
 0xd12   :  { %v1044_v22 = vmul.f32 -1.442695, %v848_v21 }
 0xd14   :  { %1403 = vpow2.f32 %v1044_v22 }
 0xd1e   :  { %v1404_v26 = vpop.eup %1403 }
 0xd1f   :  { %v858_v27 = vadd.f32 1.0, %v1404_v26 }
 0xd21   :  { %1405 = vrcp.f32 %v858_v27 }
 0xd22   :  { %1407 = vpow2.f32 %v1043_v17 }
 0xd2b   :  { %v1406_v28 = vpop.eup %1405 }
 0xd2c   :  { %861 = vrot.lane.b32.xlu1 %v1406_v28, %s1456_s14  ;;  %v1408_v6 = vpop.eup %1407 }
 0xd2d   :  { %v852_v24 = vadd.f32 1.0, %v1408_v6 }
 0xd2f   :  { %1409 = vrcp.f32 %v852_v24 }
 0xd39   :  { %v1410_v38 = vpop.eup %1409 }
 0xd3a   :  { %v865_v42 = vmul.f32 %v1410_v38, %v755_v60 }
 0xd9e   :  { %v862_v36 = vpop.permute.xlu1 %861 }
 0xd9f   :  { %v863_v37 = vmul.f32 2.0, %v862_v36 }
 0xda1   :  { %v1045_v41 = vadd.f32 -1.0, %v863_v37 }
 0xda3   :  { %v866_v43 = vmul.f32 %v1406_v28, %v1045_v41 }
 0xda5   :  { %v867_v44 = vadd.f32 %v866_v43, %v865_v42 }
 0xda7   :  { %v1046_v47 = vmul.f32 -2.0, %v867_v44 }
 0xda9   :  { %v870_v48 = vmul.f32 1.442695, %v1046_v47 }
 0xdab   :  { %1411 = vpow2.f32 %v870_v48 }
 0xdb5   :  { %v1412_v50 = vpop.eup %1411 }
 0xdb6   :  { %v872_v0 = vadd.f32 1.0, %v1412_v50 }
 0xdb8   :  { %1413 = vrcp.f32 %v872_v0 }
 0xdc2   :  { %v1414_v11 = vpop.eup %1413 }
 0xdc3   :  { %v875_v16 = vmul.f32 2.0, %v1414_v11 }
 0xdc5   :  { %v1047_v18 = vadd.f32 -1.0, %v875_v16 }
 0xdc7   :  { %877 = vrot.lane.b32.xlu1 %v1047_v18, %s1456_s14 }
 0xe39   :  { %v878_v23 = vpop.permute.xlu1 %877 }
 0xe3a   :  { %v879_v25 = vmul.f32 %v1410_v38, %v878_v23 }
 0xe3c   :  { %953 = vmatmul.mubr.f32.vlgmr.msra.gmra.mrb[6].mxu1 %v879_v25 }
 0xf0f   :  { %v954_v40 = vpop.f32.mrb[6].mxu1 }
 0xf10   :  { %v956_v45 = vpop.f32.mrb[7].mxu1  ;;  %v959_v54 = vadd.f32 %v954_v40, %v886_v53 }
 0xf11   :  { %v960_v46 = vadd.f32 %v956_v45, %v887_v39 }
 0xf12   :  { %v1048_v56 = vmul.f32 -1.442695, %v959_v54 }
 0xf13   :  { %v1049_v51 = vmul.f32 -1.442695, %v960_v46 }
 0xf15   :  { %1415 = vpow2.f32 %v1049_v51 }
 0xf1f   :  { %v1416_v52 = vpop.eup %1415 }
 0xf20   :  { %v970_v30 = vadd.f32 1.0, %v1416_v52 }
 0xf22   :  { %1417 = vrcp.f32 %v970_v30 }
 0xf23   :  { %1419 = vpow2.f32 %v1048_v56 }
 0xf2c   :  { %v1418_v55 = vpop.eup %1417 }
 0xf2d   :  { %973 = vrot.lane.b32.xlu1 %v1418_v55, %s1456_s14  ;;  %v1420_v57 = vpop.eup %1419 }
 0xf2e   :  { %v964_v61 = vadd.f32 1.0, %v1420_v57 }
 0xf30   :  { %1421 = vrcp.f32 %v964_v61 }
 0xf3a   :  { %v1422_v60 = vpop.eup %1421 }
 0xf3b   :  { %v977_v63 = vmul.f32 %v1422_v60, %v867_v44 }
 0xf9f   :  { %v974_v58 = vpop.permute.xlu1 %973 }
 0xfa0   :  { %v975_v59 = vmul.f32 2.0, %v974_v58 }
 0xfa2   :  { %v1050_v62 = vadd.f32 -1.0, %v975_v59 }
 0xfa4   :  { %v978_v2 = vmul.f32 %v1418_v55, %v1050_v62 }
 0xfa6   :  { %v979_v1 = vadd.f32 %v978_v2, %v977_v63 }
 0xfa8   :  { %v1051_v3 = vmul.f32 -2.0, %v979_v1 }
 0xfaa   :  { %v982_v4 = vmul.f32 1.442695, %v1051_v3 }
 0xfac   :  { %1423 = vpow2.f32 %v982_v4 }
 0xfb6   :  { %v1424_v5 = vpop.eup %1423 }
 0xfb7   :  { %v984_v33 = vadd.f32 1.0, %v1424_v5 }
 0xfb9   :  { %1425 = vrcp.f32 %v984_v33 }
 0xfc3   :  { %v1426_v9 = vpop.eup %1425 }
 0xfc4   :  { %v987_v7 = vmul.f32 2.0, %v1426_v9 }
 0xfc6   :  { %v1052_v8 = vadd.f32 -1.0, %v987_v7 }
 0xfc8   :  { %989 = vrot.lane.b32.xlu1 %v1052_v8, %s1456_s14 }
0x103a   :  { %v990_v12 = vpop.permute.xlu1 %989 }
0x103b   :  { %v991_v13 = vmul.f32 %v1422_v60, %v990_v12 }
0x103d   :  { %v992_v19 = vmax.f32 %v991_v13, 0.0 }
0x103f   :  { %v1000_v14 = vmul.f32 %v1053_v15, %v992_v19 }
0x1041   :  { %1001 = vadd.xlane.f32.xlu0 %v1000_v14 }
0x10ce   :  { %v1002_v21 = vpop.xlane.xlu0 %1001 }
0x10cf   :  { %v1005_v22 = vadd.f32 %v1004_v20, %v1002_v21 }
0x10d1   :  { %1007 = vst.msk [vmem:[%s1782_s6] sm:$0xff] %vm1006_vm0, %v1005_v22 }
0x10d2   :  { %1012 = vsyncpa [#allocation4], 1 }

</bundles_post_ra>
